<compile_context>
chip_gen: v7x
topology: tpu7x:2x2x1
jax: 0.10.0
libtpu: 0.0.40
codegen_flags: <defaults>
</compile_context>

<pallas_src>
import functools

import jax
import jax.numpy as jnp
from jax import lax
from jax.experimental import pallas as pl
from jax.experimental.pallas import tpu as pltpu

EPS = 1e-5  # nn.BatchNorm2d default eps


# --------------------------------------------------------------------------- #
# Tile / VMEM selection helpers (host-side, static).
# --------------------------------------------------------------------------- #
def _vmem_limit_bytes():
    cap = 128 << 20
    try:
        info = pltpu.get_tpu_info()
        cap = int(getattr(info, "vmem_capacity_bytes", cap))
    except Exception:
        pass
    # v7x (64 MiB physical) -> 48 MiB; v5e/v6e (128 MiB) -> 96 MiB.
    return int(min((cap * 3) // 4, 100 << 20))


def _pick_row_tile(N, H, W, max_lanes):
    """Pick T = W*d with d | H so tiles cover H*W exactly and masks are shared.

    T must be a multiple of 128 (lane-dense, spec-legal) or equal H*W (full
    dim, always legal).  Prefer >= 4 total tiles (feeds both v7x TCs)."""
    HW = H * W
    legal = [W * d for d in range(1, H + 1)
             if H % d == 0 and (W * d) % 128 == 0 and W * d <= max_lanes]
    if not legal:
        return HW
    pref = [t for t in legal if (N * HW) // t >= 4]
    return max(pref) if pref else max(legal)


# --------------------------------------------------------------------------- #
# Pass 1: conv (K*K tap matmuls on a haloed flat tile) + per-tile BN stats.
# --------------------------------------------------------------------------- #
def _conv_stats_kernel(x_ref, w_ref, m_ref, conv_ref, stats_ref,
                       *, K, W, pad, T, hal):
    # x_ref    : (C, T + 2*hal) bf16  haloed flat input tile (lane axis = h*W+w)
    # w_ref    : (K*K, C, C)    bf16  per-tap weights, tap index = kh*K + kw
    # m_ref    : (K, 1, T)      bf16  0/1 row-wrap masks per kw (resident)
    # conv_ref : (C, T)         bf16  conv output tile
    # stats_ref: (C, 2)         f32   [tile sum, centered sum-of-squares]
    acc = None
    for kh in range(K):
        for kw in range(K):
            off = hal + (kh - pad) * W + (kw - pad)       # static lane offset
            tap = x_ref[:, off:off + T]                   # (C, T) bf16
            if kw != pad:                                 # kill row-wrap cols
                tap = tap * m_ref[kw]
            part = jnp.dot(w_ref[kh * K + kw], tap,
                           preferred_element_type=jnp.float32)   # (C, T) f32
            acc = part if acc is None else acc + part

    conv_ref[...] = acc.astype(conv_ref.dtype)            # bf16 intermediate

    # Per-tile BN stats in f32 (from the unrounded accumulator).
    # TODO(synk): chunk this reduction with lax.fori_loop(unroll=True) when T
    # is raised to >= 4096 so acc and acc^2 don't exceed the vreg file.
    s1 = jnp.sum(acc, axis=1, keepdims=True)              # (C, 1)
    d = acc - s1 * (1.0 / T)
    stats_ref[:, 0:1] = s1
    stats_ref[:, 1:2] = jnp.sum(d * d, axis=1, keepdims=True)


# --------------------------------------------------------------------------- #
# Pass 2: folded BatchNorm affine + Swish, written straight into NCHW output.
# --------------------------------------------------------------------------- #
def _bn_swish_kernel(conv_ref, p_ref, o_ref):
    # conv_ref: (C, T) bf16 ; p_ref: (3, C, 1) f32 = [scale, shift, swish_beta]
    y = conv_ref[...].astype(jnp.float32)
    z = y * p_ref[0] + p_ref[1]
    o_ref[...] = (z * jax.nn.sigmoid(z * p_ref[2])).astype(o_ref.dtype)


# --------------------------------------------------------------------------- #
# Wrapper
# --------------------------------------------------------------------------- #
@functools.partial(jax.jit, static_argnames=("kernel_size", "row_tile"))
def conv_block_forward(x_nchw, conv_w, conv_b, bn_gamma, bn_beta, swish_beta,
                       kernel_size, row_tile=8192):
    """Forward of ConvBlock(filter, kernel). x_nchw: (N, C, H, W) float32."""
    del conv_b  # cancelled exactly by training-mode BatchNorm mean subtraction
    N, C, H, W = x_nchw.shape
    K = kernel_size
    assert K % 2 == 1, "padding=(K-1)//2 only matches PyTorch for odd kernels"
    pad = (K - 1) // 2
    HW = H * W
    R = N * HW

    vmem_limit = _vmem_limit_bytes()
    max_lanes = min(row_tile, 4096 if vmem_limit <= (48 << 20) else 8192)
    T = _pick_row_tile(N, H, W, max_lanes)   # lane tile over flattened (h, w)
    G = HW // T                              # tiles per image (T*G == H*W)
    hal = pad * W + pad                      # halo lanes needed on each side
    Thal = T + 2 * hal

    # ---- wrapper layout plumbing (cheap, ~1x input traffic) -----------------
    xf = x_nchw.reshape(N, C, HW)
    xfp = jnp.pad(xf, ((0, 0), (0, 0), (hal, hal)))
    x_halo = jnp.stack([xfp[:, :, t * T: t * T + Thal] for t in range(G)],
                       axis=1).astype(jnp.bfloat16)        # (N, G, C, T+2*hal)

    # Per-tap weights: (Cout, Cin, KH, KW) -> (K*K, Cout, Cin), tap = kh*K+kw.
    wtaps = jnp.transpose(conv_w, (2, 3, 0, 1)).reshape(K * K, C, C)
    wtaps = wtaps.astype(jnp.bfloat16)

    # 0/1 masks killing row-wrap columns for off-center kw taps (period W).
    col = jnp.arange(T) % W                                # T % W == 0 by pick
    masks = jnp.stack(
        [((col + (kw - pad) >= 0) & (col + (kw - pad) < W)).astype(jnp.bfloat16)
         for kw in range(K)], axis=0)[:, None, :]          # (K, 1, T)

    cparams = pltpu.CompilerParams(
        dimension_semantics=("parallel", "parallel"),
        vmem_limit_bytes=vmem_limit)

    conv_flat, stats = pl.pallas_call(
        functools.partial(_conv_stats_kernel, K=K, W=W, pad=pad, T=T, hal=hal),
        grid=(N, G),
        in_specs=[
            pl.BlockSpec((None, None, C, Thal), lambda n, t: (n, t, 0, 0)),
            pl.BlockSpec((K * K, C, C), lambda n, t: (0, 0, 0)),   # resident
            pl.BlockSpec((K, 1, T), lambda n, t: (0, 0, 0)),       # resident
        ],
        out_specs=[
            pl.BlockSpec((None, C, T), lambda n, t: (n, 0, t)),
            pl.BlockSpec((None, None, C, 2), lambda n, t: (n, t, 0, 0)),
        ],
        out_shape=[
            jax.ShapeDtypeStruct((N, C, HW), jnp.bfloat16),    # bf16 intermed.
            jax.ShapeDtypeStruct((N, G, C, 2), jnp.float32),   # per-tile stats
        ],
        compiler_params=cparams,
    )(x_halo, wtaps, masks)

    # ---- tiny (C,)-sized stat combine + BN affine folding (plain JAX) -------
    s1 = stats[..., 0]                                     # (N, G, C) sums
    m2 = stats[..., 1]                                     # centered SSQ/tile
    mean = jnp.sum(s1, axis=(0, 1)) / R                    # (C,)
    tile_mean = s1 / T
    ssq = jnp.sum(m2, axis=(0, 1)) + T * jnp.sum((tile_mean - mean) ** 2,
                                                 axis=(0, 1))
    var = jnp.maximum(ssq / R, 0.0)
    inv_std = lax.rsqrt(var + EPS)
    scale = bn_gamma.astype(jnp.float32) * inv_std
    shift = bn_beta.astype(jnp.float32) - mean * scale
    sb_row = jnp.broadcast_to(jnp.asarray(swish_beta, jnp.float32), (C,))
    params = jnp.stack([scale, shift, sb_row]).reshape(3, C, 1)

    y_flat = pl.pallas_call(
        _bn_swish_kernel,
        grid=(N, G),
        in_specs=[
            pl.BlockSpec((None, C, T), lambda n, t: (n, 0, t)),
            pl.BlockSpec((3, C, 1), lambda n, t: (0, 0, 0)),       # resident
        ],
        out_specs=pl.BlockSpec((None, C, T), lambda n, t: (n, 0, t)),
        out_shape=jax.ShapeDtypeStruct((N, C, HW), x_nchw.dtype),
        compiler_params=cparams,
    )(conv_flat, params)

    return y_flat.reshape(N, C, H, W)      # metadata-only reshape, no copy


# --------------------------------------------------------------------------- #
# Pure-JAX reference
# --------------------------------------------------------------------------- #
def _reference(x, w, b, gamma, beta, sbeta, K, matmul_dtype=jnp.float32):
    """matmul_dtype=bfloat16 mirrors the kernel's MXU input precision (f32
    accumulation either way); float32 is the exact module math."""
    pad = (K - 1) // 2
    conv = lax.conv_general_dilated(
        x.astype(matmul_dtype), w.astype(matmul_dtype),
        window_strides=(1, 1), padding=[(pad, pad), (pad, pad)],
        dimension_numbers=('NCHW', 'OIHW', 'NCHW'),
        preferred_element_type=jnp.float32)
    conv = conv + b.reshape(1, -1, 1, 1)
    mean = jnp.mean(conv, axis=(0, 2, 3), keepdims=True)
    var = jnp.mean((conv - mean) ** 2, axis=(0, 2, 3), keepdims=True)
    y = (conv - mean) * lax.rsqrt(var + EPS) * gamma.reshape(1, -1, 1, 1) \
        + beta.reshape(1, -1, 1, 1)
    return y * jax.nn.sigmoid(y * sbeta)


if __name__ == "__main__":
    # ConvBlock(filter=4, kernel=3) on x: (N=2, C=4, H=16, W=16), NCHW.
    filt, K = 4, 3
    N, H, W = 2, 16, 16

    key = jax.random.PRNGKey(0)
    k_x, k_w, k_b = jax.random.split(key, 3)
    x = jax.random.normal(k_x, (N, filt, H, W), jnp.float32)

    # Deterministic synthetic parameters (shapes follow the module __init__):
    fan_in = filt * K * K
    conv_w = jax.random.normal(k_w, (filt, filt, K, K), jnp.float32) / jnp.sqrt(fan_in)
    conv_b = jax.random.normal(k_b, (filt,), jnp.float32) * 0.1
    bn_gamma = jnp.ones((filt,), jnp.float32)    # nn.BatchNorm2d init: weight = 1
    bn_beta = jnp.zeros((filt,), jnp.float32)    # nn.BatchNorm2d init: bias = 0
    swish_beta = jnp.float32(1.0)                # Swish init: beta = 1.0

    # With H*W=512/image the tile picker chooses T=128 -> grid (2, 2), which
    # exercises the haloed tiling, the mask path and the stat-combine path.
    out = conv_block_forward(x, conv_w, conv_b, bn_gamma, bn_beta, swish_beta,
                             kernel_size=K)
    out = jax.block_until_ready(out)
    assert out.shape == (N, filt, H, W)

    # Primary check: reference with the same bf16 MXU-input precision (kernel
    # additionally rounds the conv intermediate to bf16 -> slightly looser tol).
    ref_bf16 = _reference(x, conv_w, conv_b, bn_gamma, bn_beta, swish_beta, K,
                          matmul_dtype=jnp.bfloat16)
    assert jnp.allclose(out, ref_bf16, rtol=2e-2, atol=2e-2), (
        float(jnp.max(jnp.abs(out - ref_bf16))))

    # Sanity check: close to the exact float32 module semantics too.
    ref_f32 = _reference(x, conv_w, conv_b, bn_gamma, bn_beta, swish_beta, K,
                         matmul_dtype=jnp.float32)
    assert jnp.allclose(out, ref_f32, rtol=1e-1, atol=1e-1), (
        float(jnp.max(jnp.abs(out - ref_f32))))

    print("KERNEL_OK")
</pallas_src>

<mosaic_0001>
module attributes {stable_mosaic.version = 11 : i64} {
  func.func @_conv_stats_kernel(%arg0: i32, %arg1: i32, %arg2: memref<1x1x4x162xbf16, #tpu.memory_space<vmem>>, %arg3: memref<9x4x4xbf16, #tpu.memory_space<vmem>>, %arg4: memref<3x1x128xbf16, #tpu.memory_space<vmem>>, %arg5: memref<1x4x128xbf16, #tpu.memory_space<vmem>>, %arg6: memref<1x1x4x2xf32, #tpu.memory_space<vmem>>) attributes {dimension_semantics = [#tpu.dimension_semantics<parallel>, #tpu.dimension_semantics<parallel>], iteration_bounds = array<i64: 2, 2>, scalar_prefetch = 0 : i64, scratch_operands = 0 : i64, tpu.core_type = #tpu.core_type<tc>, window_params = [{transform_indices = @transform_0, window_bounds = array<i64: 1, 1, 4, 162>}, {pipeline_mode = #tpu.pipeline_mode<synchronous>, transform_indices = @transform_1, window_bounds = array<i64: 9, 4, 4>}, {pipeline_mode = #tpu.pipeline_mode<synchronous>, transform_indices = @transform_2, window_bounds = array<i64: 3, 1, 128>}, {transform_indices = @transform_3, window_bounds = array<i64: 1, 4, 128>}, {transform_indices = @transform_4, window_bounds = array<i64: 1, 1, 4, 2>}]} {
    %c0 = arith.constant 0 : index
    %c0_0 = arith.constant 0 : index
    %c0_1 = arith.constant 0 : index
    %c0_2 = arith.constant 0 : index
    %0 = vector.load %arg2[%c0, %c0_0, %c0_1, %c0_2] : memref<1x1x4x162xbf16, #tpu.memory_space<vmem>>, vector<1x1x4x128xbf16>
    %1 = vector.shape_cast %0 : vector<1x1x4x128xbf16> to vector<4x128xbf16>
    %c0_3 = arith.constant 0 : index
    %c0_4 = arith.constant 0 : index
    %c0_5 = arith.constant 0 : index
    %2 = vector.load %arg4[%c0_3, %c0_4, %c0_5] : memref<3x1x128xbf16, #tpu.memory_space<vmem>>, vector<1x1x128xbf16>
    %3 = vector.shape_cast %2 : vector<1x1x128xbf16> to vector<1x128xbf16>
    %4 = vector.broadcast %3 : vector<1x128xbf16> to vector<4x128xbf16>
    %5 = arith.mulf %1, %4 : vector<4x128xbf16>
    %c0_6 = arith.constant 0 : index
    %c0_7 = arith.constant 0 : index
    %c0_8 = arith.constant 0 : index
    %6 = vector.load %arg3[%c0_6, %c0_7, %c0_8] : memref<9x4x4xbf16, #tpu.memory_space<vmem>>, vector<1x4x4xbf16>
    %7 = vector.shape_cast %6 : vector<1x4x4xbf16> to vector<4x4xbf16>
    %cst = arith.constant dense<0.000000e+00> : vector<4x128xf32>
    %8 = tpu.matmul %7, %5, %cst {dimension_numbers = #tpu.dot_dimension_numbers<[1], [0], [0], [1], [0, 0, 1, 1], [], []>} : vector<4x4xbf16>, vector<4x128xbf16>, vector<4x128xf32> -> vector<4x128xf32>
    %c0_9 = arith.constant 0 : index
    %c0_10 = arith.constant 0 : index
    %c0_11 = arith.constant 0 : index
    %c1 = arith.constant 1 : index
    %9 = vector.load %arg2[%c0_9, %c0_10, %c0_11, %c1] : memref<1x1x4x162xbf16, #tpu.memory_space<vmem>>, vector<1x1x4x128xbf16>
    %10 = vector.shape_cast %9 : vector<1x1x4x128xbf16> to vector<4x128xbf16>
    %c1_12 = arith.constant 1 : index
    %c0_13 = arith.constant 0 : index
    %c0_14 = arith.constant 0 : index
    %11 = vector.load %arg3[%c1_12, %c0_13, %c0_14] : memref<9x4x4xbf16, #tpu.memory_space<vmem>>, vector<1x4x4xbf16>
    %12 = vector.shape_cast %11 : vector<1x4x4xbf16> to vector<4x4xbf16>
    %cst_15 = arith.constant dense<0.000000e+00> : vector<4x128xf32>
    %13 = tpu.matmul %12, %10, %cst_15 {dimension_numbers = #tpu.dot_dimension_numbers<[1], [0], [0], [1], [0, 0, 1, 1], [], []>} : vector<4x4xbf16>, vector<4x128xbf16>, vector<4x128xf32> -> vector<4x128xf32>
    %14 = arith.addf %8, %13 : vector<4x128xf32>
    %c0_16 = arith.constant 0 : index
    %c0_17 = arith.constant 0 : index
    %c0_18 = arith.constant 0 : index
    %c2 = arith.constant 2 : index
    %15 = vector.load %arg2[%c0_16, %c0_17, %c0_18, %c2] : memref<1x1x4x162xbf16, #tpu.memory_space<vmem>>, vector<1x1x4x128xbf16>
    %16 = vector.shape_cast %15 : vector<1x1x4x128xbf16> to vector<4x128xbf16>
    %c2_19 = arith.constant 2 : index
    %c0_20 = arith.constant 0 : index
    %c0_21 = arith.constant 0 : index
    %17 = vector.load %arg4[%c2_19, %c0_20, %c0_21] : memref<3x1x128xbf16, #tpu.memory_space<vmem>>, vector<1x1x128xbf16>
    %18 = vector.shape_cast %17 : vector<1x1x128xbf16> to vector<1x128xbf16>
    %19 = vector.broadcast %18 : vector<1x128xbf16> to vector<4x128xbf16>
    %20 = arith.mulf %16, %19 : vector<4x128xbf16>
    %c2_22 = arith.constant 2 : index
    %c0_23 = arith.constant 0 : index
    %c0_24 = arith.constant 0 : index
    %21 = vector.load %arg3[%c2_22, %c0_23, %c0_24] : memref<9x4x4xbf16, #tpu.memory_space<vmem>>, vector<1x4x4xbf16>
    %22 = vector.shape_cast %21 : vector<1x4x4xbf16> to vector<4x4xbf16>
    %cst_25 = arith.constant dense<0.000000e+00> : vector<4x128xf32>
    %23 = tpu.matmul %22, %20, %cst_25 {dimension_numbers = #tpu.dot_dimension_numbers<[1], [0], [0], [1], [0, 0, 1, 1], [], []>} : vector<4x4xbf16>, vector<4x128xbf16>, vector<4x128xf32> -> vector<4x128xf32>
    %24 = arith.addf %14, %23 : vector<4x128xf32>
    %c0_26 = arith.constant 0 : index
    %c0_27 = arith.constant 0 : index
    %c0_28 = arith.constant 0 : index
    %c16 = arith.constant 16 : index
    %25 = vector.load %arg2[%c0_26, %c0_27, %c0_28, %c16] : memref<1x1x4x162xbf16, #tpu.memory_space<vmem>>, vector<1x1x4x128xbf16>
    %26 = vector.shape_cast %25 : vector<1x1x4x128xbf16> to vector<4x128xbf16>
    %c0_29 = arith.constant 0 : index
    %c0_30 = arith.constant 0 : index
    %c0_31 = arith.constant 0 : index
    %27 = vector.load %arg4[%c0_29, %c0_30, %c0_31] : memref<3x1x128xbf16, #tpu.memory_space<vmem>>, vector<1x1x128xbf16>
    %28 = vector.shape_cast %27 : vector<1x1x128xbf16> to vector<1x128xbf16>
    %29 = vector.broadcast %28 : vector<1x128xbf16> to vector<4x128xbf16>
    %30 = arith.mulf %26, %29 : vector<4x128xbf16>
    %c3 = arith.constant 3 : index
    %c0_32 = arith.constant 0 : index
    %c0_33 = arith.constant 0 : index
    %31 = vector.load %arg3[%c3, %c0_32, %c0_33] : memref<9x4x4xbf16, #tpu.memory_space<vmem>>, vector<1x4x4xbf16>
    %32 = vector.shape_cast %31 : vector<1x4x4xbf16> to vector<4x4xbf16>
    %cst_34 = arith.constant dense<0.000000e+00> : vector<4x128xf32>
    %33 = tpu.matmul %32, %30, %cst_34 {dimension_numbers = #tpu.dot_dimension_numbers<[1], [0], [0], [1], [0, 0, 1, 1], [], []>} : vector<4x4xbf16>, vector<4x128xbf16>, vector<4x128xf32> -> vector<4x128xf32>
    %34 = arith.addf %24, %33 : vector<4x128xf32>
    %c0_35 = arith.constant 0 : index
    %c0_36 = arith.constant 0 : index
    %c0_37 = arith.constant 0 : index
    %c17 = arith.constant 17 : index
    %35 = vector.load %arg2[%c0_35, %c0_36, %c0_37, %c17] : memref<1x1x4x162xbf16, #tpu.memory_space<vmem>>, vector<1x1x4x128xbf16>
    %36 = vector.shape_cast %35 : vector<1x1x4x128xbf16> to vector<4x128xbf16>
    %c4 = arith.constant 4 : index
    %c0_38 = arith.constant 0 : index
    %c0_39 = arith.constant 0 : index
    %37 = vector.load %arg3[%c4, %c0_38, %c0_39] : memref<9x4x4xbf16, #tpu.memory_space<vmem>>, vector<1x4x4xbf16>
    %38 = vector.shape_cast %37 : vector<1x4x4xbf16> to vector<4x4xbf16>
    %cst_40 = arith.constant dense<0.000000e+00> : vector<4x128xf32>
    %39 = tpu.matmul %38, %36, %cst_40 {dimension_numbers = #tpu.dot_dimension_numbers<[1], [0], [0], [1], [0, 0, 1, 1], [], []>} : vector<4x4xbf16>, vector<4x128xbf16>, vector<4x128xf32> -> vector<4x128xf32>
    %40 = arith.addf %34, %39 : vector<4x128xf32>
    %c0_41 = arith.constant 0 : index
    %c0_42 = arith.constant 0 : index
    %c0_43 = arith.constant 0 : index
    %c18 = arith.constant 18 : index
    %41 = vector.load %arg2[%c0_41, %c0_42, %c0_43, %c18] : memref<1x1x4x162xbf16, #tpu.memory_space<vmem>>, vector<1x1x4x128xbf16>
    %42 = vector.shape_cast %41 : vector<1x1x4x128xbf16> to vector<4x128xbf16>
    %c2_44 = arith.constant 2 : index
    %c0_45 = arith.constant 0 : index
    %c0_46 = arith.constant 0 : index
    %43 = vector.load %arg4[%c2_44, %c0_45, %c0_46] : memref<3x1x128xbf16, #tpu.memory_space<vmem>>, vector<1x1x128xbf16>
    %44 = vector.shape_cast %43 : vector<1x1x128xbf16> to vector<1x128xbf16>
    %45 = vector.broadcast %44 : vector<1x128xbf16> to vector<4x128xbf16>
    %46 = arith.mulf %42, %45 : vector<4x128xbf16>
    %c5 = arith.constant 5 : index
    %c0_47 = arith.constant 0 : index
    %c0_48 = arith.constant 0 : index
    %47 = vector.load %arg3[%c5, %c0_47, %c0_48] : memref<9x4x4xbf16, #tpu.memory_space<vmem>>, vector<1x4x4xbf16>
    %48 = vector.shape_cast %47 : vector<1x4x4xbf16> to vector<4x4xbf16>
    %cst_49 = arith.constant dense<0.000000e+00> : vector<4x128xf32>
    %49 = tpu.matmul %48, %46, %cst_49 {dimension_numbers = #tpu.dot_dimension_numbers<[1], [0], [0], [1], [0, 0, 1, 1], [], []>} : vector<4x4xbf16>, vector<4x128xbf16>, vector<4x128xf32> -> vector<4x128xf32>
    %50 = arith.addf %40, %49 : vector<4x128xf32>
    %c0_50 = arith.constant 0 : index
    %c0_51 = arith.constant 0 : index
    %c0_52 = arith.constant 0 : index
    %c32 = arith.constant 32 : index
    %51 = vector.load %arg2[%c0_50, %c0_51, %c0_52, %c32] : memref<1x1x4x162xbf16, #tpu.memory_space<vmem>>, vector<1x1x4x128xbf16>
    %52 = vector.shape_cast %51 : vector<1x1x4x128xbf16> to vector<4x128xbf16>
    %c0_53 = arith.constant 0 : index
    %c0_54 = arith.constant 0 : index
    %c0_55 = arith.constant 0 : index
    %53 = vector.load %arg4[%c0_53, %c0_54, %c0_55] : memref<3x1x128xbf16, #tpu.memory_space<vmem>>, vector<1x1x128xbf16>
    %54 = vector.shape_cast %53 : vector<1x1x128xbf16> to vector<1x128xbf16>
    %55 = vector.broadcast %54 : vector<1x128xbf16> to vector<4x128xbf16>
    %56 = arith.mulf %52, %55 : vector<4x128xbf16>
    %c6 = arith.constant 6 : index
    %c0_56 = arith.constant 0 : index
    %c0_57 = arith.constant 0 : index
    %57 = vector.load %arg3[%c6, %c0_56, %c0_57] : memref<9x4x4xbf16, #tpu.memory_space<vmem>>, vector<1x4x4xbf16>
    %58 = vector.shape_cast %57 : vector<1x4x4xbf16> to vector<4x4xbf16>
    %cst_58 = arith.constant dense<0.000000e+00> : vector<4x128xf32>
    %59 = tpu.matmul %58, %56, %cst_58 {dimension_numbers = #tpu.dot_dimension_numbers<[1], [0], [0], [1], [0, 0, 1, 1], [], []>} : vector<4x4xbf16>, vector<4x128xbf16>, vector<4x128xf32> -> vector<4x128xf32>
    %60 = arith.addf %50, %59 : vector<4x128xf32>
    %c0_59 = arith.constant 0 : index
    %c0_60 = arith.constant 0 : index
    %c0_61 = arith.constant 0 : index
    %c33 = arith.constant 33 : index
    %61 = vector.load %arg2[%c0_59, %c0_60, %c0_61, %c33] : memref<1x1x4x162xbf16, #tpu.memory_space<vmem>>, vector<1x1x4x128xbf16>
    %62 = vector.shape_cast %61 : vector<1x1x4x128xbf16> to vector<4x128xbf16>
    %c7 = arith.constant 7 : index
    %c0_62 = arith.constant 0 : index
    %c0_63 = arith.constant 0 : index
    %63 = vector.load %arg3[%c7, %c0_62, %c0_63] : memref<9x4x4xbf16, #tpu.memory_space<vmem>>, vector<1x4x4xbf16>
    %64 = vector.shape_cast %63 : vector<1x4x4xbf16> to vector<4x4xbf16>
    %cst_64 = arith.constant dense<0.000000e+00> : vector<4x128xf32>
    %65 = tpu.matmul %64, %62, %cst_64 {dimension_numbers = #tpu.dot_dimension_numbers<[1], [0], [0], [1], [0, 0, 1, 1], [], []>} : vector<4x4xbf16>, vector<4x128xbf16>, vector<4x128xf32> -> vector<4x128xf32>
    %66 = arith.addf %60, %65 : vector<4x128xf32>
    %c0_65 = arith.constant 0 : index
    %c0_66 = arith.constant 0 : index
    %c0_67 = arith.constant 0 : index
    %c34 = arith.constant 34 : index
    %67 = vector.load %arg2[%c0_65, %c0_66, %c0_67, %c34] : memref<1x1x4x162xbf16, #tpu.memory_space<vmem>>, vector<1x1x4x128xbf16>
    %68 = vector.shape_cast %67 : vector<1x1x4x128xbf16> to vector<4x128xbf16>
    %c2_68 = arith.constant 2 : index
    %c0_69 = arith.constant 0 : index
    %c0_70 = arith.constant 0 : index
    %69 = vector.load %arg4[%c2_68, %c0_69, %c0_70] : memref<3x1x128xbf16, #tpu.memory_space<vmem>>, vector<1x1x128xbf16>
    %70 = vector.shape_cast %69 : vector<1x1x128xbf16> to vector<1x128xbf16>
    %71 = vector.broadcast %70 : vector<1x128xbf16> to vector<4x128xbf16>
    %72 = arith.mulf %68, %71 : vector<4x128xbf16>
    %c8 = arith.constant 8 : index
    %c0_71 = arith.constant 0 : index
    %c0_72 = arith.constant 0 : index
    %73 = vector.load %arg3[%c8, %c0_71, %c0_72] : memref<9x4x4xbf16, #tpu.memory_space<vmem>>, vector<1x4x4xbf16>
    %74 = vector.shape_cast %73 : vector<1x4x4xbf16> to vector<4x4xbf16>
    %cst_73 = arith.constant dense<0.000000e+00> : vector<4x128xf32>
    %75 = tpu.matmul %74, %72, %cst_73 {dimension_numbers = #tpu.dot_dimension_numbers<[1], [0], [0], [1], [0, 0, 1, 1], [], []>} : vector<4x4xbf16>, vector<4x128xbf16>, vector<4x128xf32> -> vector<4x128xf32>
    %76 = arith.addf %66, %75 : vector<4x128xf32>
    %77 = arith.truncf %76 : vector<4x128xf32> to vector<4x128xbf16>
    %c0_74 = arith.constant 0 : index
    %c0_75 = arith.constant 0 : index
    %c0_76 = arith.constant 0 : index
    %78 = vector.load %arg5[%c0_74, %c0_75, %c0_76] : memref<1x4x128xbf16, #tpu.memory_space<vmem>>, vector<1x4x128xbf16>
    %79 = vector.shape_cast %78 : vector<1x4x128xbf16> to vector<4x128xbf16>
    %80 = vector.shape_cast %77 : vector<4x128xbf16> to vector<1x4x128xbf16>
    tpu.vector_store %arg5[%c0_74, %c0_75, %c0_76], %80 {strides = array<i32>} : memref<1x4x128xbf16, #tpu.memory_space<vmem>>, vector<1x4x128xbf16>,
    %cst_77 = arith.constant dense<0.000000e+00> : vector<4xf32>
    %81 = vector.multi_reduction <add>, %76, %cst_77 [1] : vector<4x128xf32> to vector<4xf32>
    %82 = vector.shape_cast %81 : vector<4xf32> to vector<4x1xf32>
    %cst_78 = arith.constant 7.812500e-03 : f32
    %83 = vector.broadcast %cst_78 : f32 to vector<4x1xf32>
    %84 = arith.mulf %82, %83 : vector<4x1xf32>
    %85 = vector.broadcast %84 : vector<4x1xf32> to vector<4x128xf32>
    %86 = arith.subf %76, %85 : vector<4x128xf32>
    %c0_79 = arith.constant 0 : index
    %c0_80 = arith.constant 0 : index
    %c0_81 = arith.constant 0 : index
    %c0_82 = arith.constant 0 : index
    %87 = vector.load %arg6[%c0_79, %c0_80, %c0_81, %c0_82] : memref<1x1x4x2xf32, #tpu.memory_space<vmem>>, vector<1x1x4x1xf32>
    %88 = vector.shape_cast %87 : vector<1x1x4x1xf32> to vector<4x1xf32>
    %89 = vector.shape_cast %82 : vector<4x1xf32> to vector<1x1x4x1xf32>
    tpu.vector_store %arg6[%c0_79, %c0_80, %c0_81, %c0_82], %89 {strides = array<i32>} : memref<1x1x4x2xf32, #tpu.memory_space<vmem>>, vector<1x1x4x1xf32>,
    %90 = arith.mulf %86, %86 : vector<4x128xf32>
    %cst_83 = arith.constant dense<0.000000e+00> : vector<4xf32>
    %91 = vector.multi_reduction <add>, %90, %cst_83 [1] : vector<4x128xf32> to vector<4xf32>
    %92 = vector.shape_cast %91 : vector<4xf32> to vector<4x1xf32>
    %c0_84 = arith.constant 0 : index
    %c0_85 = arith.constant 0 : index
    %c0_86 = arith.constant 0 : index
    %c1_87 = arith.constant 1 : index
    %93 = vector.load %arg6[%c0_84, %c0_85, %c0_86, %c1_87] : memref<1x1x4x2xf32, #tpu.memory_space<vmem>>, vector<1x1x4x1xf32>
    %94 = vector.shape_cast %93 : vector<1x1x4x1xf32> to vector<4x1xf32>
    %95 = vector.shape_cast %92 : vector<4x1xf32> to vector<1x1x4x1xf32>
    tpu.vector_store %arg6[%c0_84, %c0_85, %c0_86, %c1_87], %95 {strides = array<i32>} : memref<1x1x4x2xf32, #tpu.memory_space<vmem>>, vector<1x1x4x1xf32>,
    return
  }
  func.func @transform_0(%arg0: i32, %arg1: i32) -> (i32, i32, i32, i32) {
    %c0_i32 = arith.constant 0 : i32
    %c0_i32_0 = arith.constant 0 : i32
    %c0_i32_1 = arith.constant 0 : i32
    return %arg0, %arg1, %c0_i32, %c0_i32_0 : i32, i32, i32, i32
  }
  func.func @transform_1(%arg0: i32, %arg1: i32) -> (i32, i32, i32) {
    %c0_i32 = arith.constant 0 : i32
    %c0_i32_0 = arith.constant 0 : i32
    %c0_i32_1 = arith.constant 0 : i32
    %c0_i32_2 = arith.constant 0 : i32
    return %c0_i32, %c0_i32_0, %c0_i32_1 : i32, i32, i32
  }
  func.func @transform_2(%arg0: i32, %arg1: i32) -> (i32, i32, i32) {
    %c0_i32 = arith.constant 0 : i32
    %c0_i32_0 = arith.constant 0 : i32
    %c0_i32_1 = arith.constant 0 : i32
    %c0_i32_2 = arith.constant 0 : i32
    return %c0_i32, %c0_i32_0, %c0_i32_1 : i32, i32, i32
  }
  func.func @transform_3(%arg0: i32, %arg1: i32) -> (i32, i32, i32) {
    %c0_i32 = arith.constant 0 : i32
    %c0_i32_0 = arith.constant 0 : i32
    return %arg0, %c0_i32, %arg1 : i32, i32, i32
  }
  func.func @transform_4(%arg0: i32, %arg1: i32) -> (i32, i32, i32, i32) {
    %c0_i32 = arith.constant 0 : i32
    %c0_i32_0 = arith.constant 0 : i32
    %c0_i32_1 = arith.constant 0 : i32
    return %arg0, %arg1, %c0_i32, %c0_i32_0 : i32, i32, i32, i32
  }
}

module attributes {stable_mosaic.version = 11 : i64} {
  func.func @_bn_swish_kernel(%arg0: i32, %arg1: i32, %arg2: memref<1x4x128xbf16, #tpu.memory_space<vmem>>, %arg3: memref<3x4x1xf32, #tpu.memory_space<vmem>>, %arg4: memref<1x4x128xf32, #tpu.memory_space<vmem>>) attributes {dimension_semantics = [#tpu.dimension_semantics<parallel>, #tpu.dimension_semantics<parallel>], iteration_bounds = array<i64: 2, 2>, scalar_prefetch = 0 : i64, scratch_operands = 0 : i64, tpu.core_type = #tpu.core_type<tc>, window_params = [{transform_indices = @transform_0, window_bounds = array<i64: 1, 4, 128>}, {pipeline_mode = #tpu.pipeline_mode<synchronous>, transform_indices = @transform_1, window_bounds = array<i64: 3, 4, 1>}, {transform_indices = @transform_2, window_bounds = array<i64: 1, 4, 128>}]} {
    %c0 = arith.constant 0 : index
    %c0_0 = arith.constant 0 : index
    %c0_1 = arith.constant 0 : index
    %0 = vector.load %arg2[%c0, %c0_0, %c0_1] : memref<1x4x128xbf16, #tpu.memory_space<vmem>>, vector<1x4x128xbf16>
    %1 = vector.shape_cast %0 : vector<1x4x128xbf16> to vector<4x128xbf16>
    %2 = arith.extf %1 : vector<4x128xbf16> to vector<4x128xf32>
    %c0_2 = arith.constant 0 : index
    %c0_3 = arith.constant 0 : index
    %c0_4 = arith.constant 0 : index
    %3 = vector.load %arg3[%c0_2, %c0_3, %c0_4] : memref<3x4x1xf32, #tpu.memory_space<vmem>>, vector<1x4x1xf32>
    %4 = vector.shape_cast %3 : vector<1x4x1xf32> to vector<4x1xf32>
    %5 = vector.broadcast %4 : vector<4x1xf32> to vector<4x128xf32>
    %6 = arith.mulf %2, %5 : vector<4x128xf32>
    %c1 = arith.constant 1 : index
    %c0_5 = arith.constant 0 : index
    %c0_6 = arith.constant 0 : index
    %7 = vector.load %arg3[%c1, %c0_5, %c0_6] : memref<3x4x1xf32, #tpu.memory_space<vmem>>, vector<1x4x1xf32>
    %8 = vector.shape_cast %7 : vector<1x4x1xf32> to vector<4x1xf32>
    %9 = vector.broadcast %8 : vector<4x1xf32> to vector<4x128xf32>
    %10 = arith.addf %6, %9 : vector<4x128xf32>
    %c2 = arith.constant 2 : index
    %c0_7 = arith.constant 0 : index
    %c0_8 = arith.constant 0 : index
    %11 = vector.load %arg3[%c2, %c0_7, %c0_8] : memref<3x4x1xf32, #tpu.memory_space<vmem>>, vector<1x4x1xf32>
    %12 = vector.shape_cast %11 : vector<1x4x1xf32> to vector<4x1xf32>
    %13 = vector.broadcast %12 : vector<4x1xf32> to vector<4x128xf32>
    %14 = arith.mulf %10, %13 : vector<4x128xf32>
    %15 = arith.negf %14 : vector<4x128xf32>
    %16 = math.exp %15 : vector<4x128xf32>
    %cst = arith.constant 1.000000e+00 : f32
    %17 = vector.broadcast %cst : f32 to vector<4x128xf32>
    %18 = arith.addf %17, %16 : vector<4x128xf32>
    %19 = arith.divf %17, %18 : vector<4x128xf32>
    %20 = arith.mulf %10, %19 : vector<4x128xf32>
    %c0_9 = arith.constant 0 : index
    %c0_10 = arith.constant 0 : index
    %c0_11 = arith.constant 0 : index
    %21 = vector.load %arg4[%c0_9, %c0_10, %c0_11] : memref<1x4x128xf32, #tpu.memory_space<vmem>>, vector<1x4x128xf32>
    %22 = vector.shape_cast %21 : vector<1x4x128xf32> to vector<4x128xf32>
    %23 = vector.shape_cast %20 : vector<4x128xf32> to vector<1x4x128xf32>
    tpu.vector_store %arg4[%c0_9, %c0_10, %c0_11], %23 {strides = array<i32>} : memref<1x4x128xf32, #tpu.memory_space<vmem>>, vector<1x4x128xf32>,
    return
  }
  func.func @transform_0(%arg0: i32, %arg1: i32) -> (i32, i32, i32) {
    %c0_i32 = arith.constant 0 : i32
    %c0_i32_0 = arith.constant 0 : i32
    return %arg0, %c0_i32, %arg1 : i32, i32, i32
  }
  func.func @transform_1(%arg0: i32, %arg1: i32) -> (i32, i32, i32) {
    %c0_i32 = arith.constant 0 : i32
    %c0_i32_0 = arith.constant 0 : i32
    %c0_i32_1 = arith.constant 0 : i32
    %c0_i32_2 = arith.constant 0 : i32
    return %c0_i32, %c0_i32_0, %c0_i32_1 : i32, i32, i32
  }
  func.func @transform_2(%arg0: i32, %arg1: i32) -> (i32, i32, i32) {
    %c0_i32 = arith.constant 0 : i32
    %c0_i32_0 = arith.constant 0 : i32
    return %arg0, %c0_i32, %arg1 : i32, i32, i32
  }
}

</mosaic_0001>

<bundles_post_ra>
// kernel: conv_block_forward.3
= control target key start
LH: loop header
LB: loop body
LE: loop exit
PB: predicated region body
PF: predicated region fallthrough
CT: control target
= control target key end

     0   :  { %s874_s0 = inlined_call_operand.hbm [shape: bf16[2,4,256], index: 0, kind: input, shape index: {}]   ;;  %s875_s1 = inlined_call_operand.hbm [shape: f32[3,4,1], index: 1, kind: input, shape index: {}]   ;;  %s876_s2 = inlined_call_operand.hbm [shape: f32[2,4,256], index: 2, kind: output, shape index: {}]  }
   0x1   :  { %883 = sst [smem:[#allocation13_spill]] %s875_s1 }
   0x2   :  { %7 = vsyncpa [#allocation3], 0 }
   0x3   :  { %9 = vsyncpa [#allocation3 + $0x1], 0 }
   0x4   :  { %10 = vsyncpa [#allocation6], 0 }
   0x5   :  { %11 = vsyncpa [#allocation4], 0 }
   0x6   :  { %13 = vsyncpa [#allocation4 + $0x1], 0  ;;  %s635_s9 = smov 0   ;;  %s637_s10 = smov 0  }
   0x7   :  { %s639_s11 = smov 0   ;;  %s641_s12 = smov 0  }
   0x8   :  { %s643_s13 = smov 0   ;;  %s645_s14 = smov 0  }
   0x9   :  { %s647_s15 = smov 0   ;;  %s649_s16 = smov 0  }
   0xa LB: > { %s336_s17 = sadd.s32 4294967295, %s612_s16   ;;  %s337_s18 = sadd.s32 4294967294, %s612_s16   ;;  %s612_s16 = sphi %s649_s16, %s19_s16   ;;  %s608_s15 = sphi %s647_s15, %s909_s15   ;;  %s604_s14 = sphi %s645_s14, %s908_s14   ;;  %s600_s13 = sphi %s643_s13, %s907_s13   ;;  %s596_s12 = sphi %s641_s12, %s906_s12   ;;  %s592_s11 = sphi %s639_s11, %s905_s11   ;;  %s588_s10 = sphi %s637_s10, %s904_s10   ;;  %s584_s9 = sphi %s635_s9, %s903_s9  }
   0xb   : > { %p53_p0 = scmp.ne.s32.totalorder %s588_s10, %s584_s9  ;;  %p679_p1 = scmp.eq.s32.totalorder %s336_s17, 0 }
   0xc   : > { %p683_p2 = scmp.eq.s32.totalorder %s336_s17, 3  ;;  %p106_p3 = scmp.eq.s32.totalorder %s337_s18, 3 }
   0xd   : > { %s884_s19 = scalar_select %p679_p1, 1, 0 }
   0xe   : > { %s885_s20 = scalar_select %p683_p2, 1, 0 }
   0xf   : > { %p689_p4 = por %p679_p1, %p53_p0  ;;  %p338_p5 = scmp.ge.s32.totalorder %s612_s16, 1 }
  0x10   : > { %p694_p6 = por %p106_p3, %p53_p0  ;;  %p113_p7 = scmp.lt.s32.totalorder %s612_s16, 5 }
  0x11   : > { %s886_s21 = scalar_select %p689_p4, 1, 0 }
  0x12   : > { %s887_s22 = scalar_select %p694_p6, 1, 0 }
  0x13   : > { %p699_p8 = pnand %p338_p5, %p113_p7  ;;  %s614_s24 = smov [#allocation5]  }
  0x14   : > { %888 = sst [smem:[#allocation11_spill]] %s887_s22  ;;  %s125_s25 = sshll.u32 %s614_s24, 4  ;;  %s126_s25 = int_to_ptr.vmem [resolvable:$true] %s125_s25 }
  0x15   : > { %s889_s23 = scalar_select %p699_p8, 1, 0 }
  0x16   : > { %p362_p9 = pneg %p699_p8  ;;  %s891_s1 = sld [smem:[#allocation13_spill]] }
  0x18   : > { %p707_p10 = pnand %p362_p9, %p679_p1 }
  0x1a   : > { %p454_p12 = pneg %p707_p10 }
  0x1c   : > { %s452_s29 = scalar_lea.hbm %s891_s1, 192 }
  0x1d   : > { %p453_p11 = scmp.ne.s32.totalorder %s891_s1, %s452_s29  ;;  %p459_p3 = scmp.lt.u32.totalorder %s452_s29, %s891_s1 }
  0x1f   : > { %p455_p13 = pnand %p454_p12, %p453_p11 }
  0x21   : > { %p456_p0 = pneg %p455_p13 }
  0x23   : > { %p461_p5 = pnand %p459_p3, %p456_p0 }
  0x25   : > { %464 = shalt.err (!%p461_p5)
}
  0x26   : > { %s465_s6 = scalar_lea.vmem %s126_s25, 192  ;;  %p473_p1 = scmp.lt.s32.totalorder %s126_s25, %s126_s25 }
  0x27   : > { %p466_p7 = scmp.ne.s32.totalorder %s126_s25, %s465_s6  ;;  %p474_p4 = scmp.lt.s32.totalorder %s465_s6, %s465_s6 }
  0x29   : > { %p468_p9 = pnand %p466_p7, %p454_p12  ;;  %p475_p8 = por %p474_p4, %p473_p1 }
  0x2b   : > { %p469_p6 = pneg %p468_p9 }
  0x2d   : > { %p476_p2 = pnand %p475_p8, %p469_p6 }
  0x2f   : > { %479 = shalt.err (!%p476_p2)
}
  0x30   : > { %s615_s7 = smov 64   ;;  %s616_s8 = smov 4  }
  0x31   : > { %365 = dma.hbm_to_vmem [thread:$0]  (!%p707_p10), %s891_s1, 192, %s126_s25, [#allocation6], %s615_s7, %s615_s7, %s616_s8  }
  0x32   : > { %s28_s24 = sadd.s32 1, %s604_s14  ;;  %s31_s27 = sadd.s32 1, %s608_s15 }
  0x33   : > { %p29_p1 = scmp.ge.s32.totalorder %s28_s24, 2  ;;  %s40_s28 = sadd.s32 1, %s592_s11 }
  0x34   : > { %p47_p2 = scmp.ne.s32.totalorder %s592_s11, %s588_s10  ;;  %p48_p4 = scmp.eq.s32.totalorder %s612_s16, 0 }
  0x35   : > { %s911_s24 = smov (%p29_p1, %s28_s24), 0  ;;  %s913_s27 = smov (!%p29_p1, %s31_s27), %s608_s15 }
  0x36   : > { %892 = sst [smem:[#allocation12_spill]] %s911_s24  ;;  %s36_s29 = ssub.s32 %s604_s14, %s911_s24 }
  0x37   : > { %p33_p6 = scmp.ge.s32.totalorder %s913_s27, 2  ;;  %p893_p8 = scmp.ne.s32.totalorder %s885_s20, 0 }
  0x38   : > { %p744_p10 = por %p48_p4, %p47_p2  ;;  %p375_p12 = scmp.lt.s32.totalorder %s612_s16, 4 }
  0x39   : > { %p740_p11 = por %p893_p8, %p47_p2  ;;  %s915_s27 = smov (%p33_p6, %s913_s27), 0 }
  0x3a   : > { %s139_s30 = sand.u32 1, %s592_s11   ;;  %s342_s3 = sshll.u32 %s608_s15, 1 }
  0x3b   : > { %s35_s4 = ssub.s32 %s608_s15, %s915_s27  ;;  %s341_s6 = sshll.u32 %s139_s30, 1 }
  0x3c   : > { %s37_s5 = sor.u32 %s36_s29, %s35_s4  ;;  %s148_s20 = sadd.s32 %s604_s14, %s342_s3 }
  0x3d   : > { %p38_p13 = scmp.eq.s32.totalorder %s37_s5, 0  ;;  %s143_s7 = scalar_lea.vmem [#allocation2], %s341_s6 }
  0x3e   : > { %s152_s8 = sshll.u32 %s143_s7, 4  ;;  %s343_s18 = sshll.u32 %s148_s20, 5  ;;  %s759_s8 = int_to_ptr.vmem [resolvable:$true] %s152_s8 }
  0x3f   : > { %s757_s17 = scalar_select %p38_p13, %s592_s11, %s40_s28  }
  0x40   : > { %s764_s22 = scalar_lea.hbm %s874_s0, %s343_s18  ;;  %p770_p0 = pnand %p375_p12, %p744_p10 }
  0x41   : > { %s140_s28 = scalar_lea.sflag [#allocation3], %s139_s30  ;;  %s480_s3 = scalar_lea.hbm %s764_s22, 32 }
  0x42   : > { %p481_p3 = scmp.ne.s32.totalorder %s764_s22, %s480_s3  ;;  %p482_p5 = pneg %p770_p0 }
  0x43   : > { %s485_s25 = scalar_lea.hbm %s874_s0, 128  ;;  %p486_p1 = scmp.lt.u32.totalorder %s764_s22, %s874_s0 }
  0x44   : > { %p483_p7 = pnand %p482_p5, %p481_p3  ;;  %p487_p2 = scmp.lt.u32.totalorder %s485_s25, %s480_s3 }
  0x45   : > { %p489_p6 = scmp.lt.u32.totalorder %s480_s3, %s764_s22 }
  0x46   : > { %p484_p9 = pneg %p483_p7  ;;  %p488_p4 = por %p487_p2, %p486_p1 }
  0x48   : > { %p490_p8 = por %p489_p6, %p488_p4 }
  0x4a   : > { %p491_p10 = pnand %p490_p8, %p484_p9 }
  0x4c   : > { %494 = shalt.err (!%p491_p10)
}
  0x4d   : > { %s495_s30 = scalar_lea.vmem %s759_s8, 32  ;;  %s617_s6 = smov [#allocation2]  }
  0x4e   : > { %p496_p12 = scmp.ne.s32.totalorder %s759_s8, %s495_s30  ;;  %s500_s20 = sshll.u32 %s617_s6, 4  ;;  %s501_s20 = int_to_ptr.vmem [resolvable:$false] %s500_s20 }
  0x4f   : > { %s502_s7 = scalar_lea.vmem %s501_s20, 64  ;;  %p503_p7 = scmp.lt.s32.totalorder %s759_s8, %s501_s20 }
  0x50   : > { %p498_p13 = pnand %p496_p12, %p482_p5  ;;  %p504_p1 = scmp.lt.s32.totalorder %s502_s7, %s495_s30 }
  0x52   : > { %p499_p3 = pneg %p498_p13  ;;  %p505_p2 = por %p504_p1, %p503_p7 }
  0x54   : > { %p506_p4 = pnand %p505_p2, %p499_p3 }
  0x56   : > { %509 = shalt.err (!%p506_p4)
}
  0x57   : > { %369 = dma.hbm_to_vmem [thread:$0]  (!%p770_p0), %s764_s22, 32, %s759_s8, %s140_s28  }
  0x58   : > { %p897_p9 = scmp.ne.s32.totalorder %s889_s23, 0 }
  0x59   : > { %s802_s18 = sand.u32 (!%p897_p9), 1, %s588_s10   ;;  %p898_p5 = scmp.ne.s32.totalorder (!%p897_p9), %s886_s21, 0 }
  0x5a   : > { %161 = sbr.rel (%p897_p9) target bundleno = 281 (0x119), region = 28  ;;  %s345_s3 = sshll.u32 (!%p897_p9), %s802_s18, 1 }
  0x5b   : > { %s164_s1 = scalar_lea.sflag (!%p897_p9), [#allocation3], %s802_s18  ;;  %s167_s24 = scalar_lea.vmem (!%p897_p9), [#allocation2], %s345_s3 }
  0x61   : > { %571 = dma.done.wait (%p898_p5), %s164_s1, 32  }
  0x62   : > { %573 = vsyncadd (%p898_p5), %s164_s1, 4294967264  ;;  %p899_p6 = scmp.ne.s32.totalorder %s884_s19, 0 }
  0x64   : > { %575 = dma.done.wait (%p899_p6), [#allocation6], 192  }
  0x65   : > { %577 = vsyncadd (%p899_p6), [#allocation6], 4294967104  ;;  %v618_v0 = vmov 0   ;;  %v194_v1 = vld [vmem:[#allocation5] sm:$0xf]  ;;  %s347_s19 = sshll.u32 %s802_s18, 2 }
  0x66   : > { %446 = vset.pattern.permute.xlu0 %v618_v0  ;;  %447 = vset.pattern.permute.xlu1 %v618_v0  ;;  %v210_v2 = vld [vmem:[#allocation5 + $0x8] sm:$0xf]  ;;  %v202_v3 = vld [vmem:[#allocation5 + $0x4] sm:$0xf]  ;;  %v192_v4 = vld [vmem:[%s167_s24] sm:$0x3] }
  0x67   : > { %197 = vperm.xlu0 %446, %v194_v1   ;;  %213 = vperm.xlu1 %447, %v210_v2   ;;  %v193_v5 = vunpack.c.l.bf16 %v192_v4  ;;  %s350_s21 = sshll.u32 %s600_s13, 1  ;;  %s191_s8 = scalar_lea.vmem [#allocation7], %s347_s19 }
  0x68   : > { %s237_s22 = sadd.s32 %s596_s12, %s350_s21  ;;  %s241_s29 = sshll.u32 %s191_s8, 4  ;;  %s822_s29 = int_to_ptr.vmem [resolvable:$true] %s241_s29 }
  0x69   : > { %s351_s23 = sshll.u32 %s237_s22, 6  ;;  %s226_s5 = scalar_lea.sflag [#allocation4], %s802_s18 }
  0x6a   : > { %s820_s4 = scalar_lea.hbm %s876_s2, %s351_s23  ;;  %s510_s30 = scalar_lea.vmem %s822_s29, 64 }
  0x6b   : > { %205 = vperm.xlu0 %446, %v202_v3   ;;  %p511_p0 = scmp.ne.s32.totalorder %s822_s29, %s510_s30  ;;  %s619_s12 = smov [#allocation7]  }
  0x6c   : > { %s514_s13 = sshll.u32 %s619_s12, 4  ;;  %s515_s13 = int_to_ptr.vmem [resolvable:$false] %s514_s13 }
  0x6d   : > { %p512_p8 = pnand %p511_p0, %p740_p11  ;;  %s516_s6 = scalar_lea.vmem %s515_s13, 128 }
  0x6e   : > { %p517_p12 = scmp.lt.s32.totalorder %s822_s29, %s515_s13  ;;  %p518_p13 = scmp.lt.s32.totalorder %s516_s6, %s510_s30 }
  0x6f   : > { %p513_p10 = pneg %p512_p8 }
  0x70   : > { %p519_p3 = por %p518_p13, %p517_p12 }
  0x72   : > { %p520_p7 = pnand %p519_p3, %p513_p10 }
  0xe6   : > { %v198_v6 = vpop.permute.xlu0 %197  ;;  %v214_v9 = vpop.permute.xlu1 %213 }
  0xe7   : > { %v200_v7 = vmul.f32 %v198_v6, %v193_v5 }
  0xea   : > { %v206_v8 = vpop.permute.xlu0 %205 }
  0xeb   : > { %v208_v10 = vadd.f32 %v206_v8, %v200_v7 }
  0xed   : > { %v216_v11 = vmul.f32 %v214_v9, %v208_v10 }
  0xef   : > { %v348_v12 = vmul.f32 -1.442695, %v216_v11 }
  0xf1   : > { %448 = vpow2.f32 %v348_v12 }
  0xfb   : > { %v449_v13 = vpop.eup %448 }
  0xfc   : > { %v220_v14 = vadd.f32 1.0, %v449_v13 }
  0xfe   : > { %450 = vrcp.f32 %v220_v14 }
 0x108   : > { %v451_v15 = vpop.eup %450 }
 0x109   : > { %v223_v16 = vmul.f32 %v451_v15, %v208_v10 }
 0x10b   : > { %224 = vst [vmem:[%s191_s8] sm:$0xf] %v223_v16 }
 0x10c   : > { %523 = shalt.err (!%p520_p7)
}
 0x10d   : > { %s524_s20 = scalar_lea.hbm %s820_s4, 64  ;;  %s528_s3 = scalar_lea.hbm %s876_s2, 256 }
 0x10e   : > { %p525_p1 = scmp.ne.s32.totalorder %s820_s4, %s524_s20  ;;  %p529_p9 = scmp.lt.u32.totalorder %s820_s4, %s876_s2 }
 0x10f   : > { %p530_p5 = scmp.lt.u32.totalorder %s528_s3, %s524_s20  ;;  %p532_p0 = scmp.lt.u32.totalorder %s524_s20, %s820_s4 }
 0x110   : > { %p526_p2 = pnand %p525_p1, %p740_p11 }
 0x111   : > { %p531_p6 = por %p530_p5, %p529_p9 }
 0x112   : > { %p527_p4 = pneg %p526_p2 }
 0x113   : > { %p533_p8 = por %p532_p0, %p531_p6 }
 0x115   : > { %p534_p10 = pnand %p533_p8, %p527_p4 }
 0x117   : > { %537 = shalt.err (!%p534_p10)
}
 0x118   : > { %360 = dma.vmem_to_hbm [thread:$0]  (%p740_p11), %s822_s29, 64, %s820_s4, %s226_s5  }
 0x119 PF: > { %s900_s19 = sld [smem:[#allocation11_spill]]  ;;  %p377_p12 = scmp.ge.s32.totalorder %s612_s16, 2 }
 0x11a   : > { %s253_s21 = sand.u32 1, %s584_s9  }
 0x11b   : > { %s254_s22 = scalar_lea.sflag [#allocation4], %s253_s21 }
 0x11f   : > { %p901_p13 = scmp.ne.s32.totalorder %s900_s19, 0 }
 0x121   : > { %p371_p3 = pnand %p377_p12, %p901_p13 }
 0x123   : > { %579 = dma.done.wait (!%p371_p3), %s254_s22, 64  }
 0x124   : > { %581 = vsyncadd (!%p371_p3), %s254_s22, 4294967232  ;;  %s19_s16 = sadd.s32 1, %s612_s16   ;;  %s902_s26 = sld [smem:[#allocation12_spill]] }
 0x125   : > { %p16_p7 = scmp.ge.s32.totalorder %s19_s16, 6   ;;  %s903_s9 = smov %s588_s10 }
 0x126   : > { %s904_s10 = smov %s592_s11  ;;  %s905_s11 = smov %s757_s17 }
 0x127   : > { %s906_s12 = smov %s604_s14  ;;  %s907_s13 = smov %s608_s15 }
 0x128   : > { %s909_s15 = smov %s915_s27  ;;  %18 = sbr.rel (!%p16_p7) target bundleno = 10 (0xa), region = 79 }
 0x12a   : > { %s908_s14 = smov %s902_s26 }
 0x12f   :  { %259 = vsyncpa [#allocation3], 1 }
 0x130   :  { %261 = vsyncpa [#allocation3 + $0x1], 1 }
 0x131   :  { %262 = vsyncpa [#allocation6], 1 }
 0x132   :  { %263 = vsyncpa [#allocation4], 1 }
 0x133   :  { %265 = vsyncpa [#allocation4 + $0x1], 1 }

// kernel: conv_block_forward.2
= control target key start
LH: loop header
LB: loop body
LE: loop exit
PB: predicated region body
PF: predicated region fallthrough
CT: control target
= control target key end

     0   :  { %s2027_s0 = inlined_call_operand.hbm [shape: bf16[2,2,4,162], index: 0, kind: input, shape index: {}]   ;;  %s2028_s1 = inlined_call_operand.hbm [shape: bf16[9,4,4], index: 1, kind: input, shape index: {}]   ;;  %s2029_s2 = inlined_call_operand.hbm [shape: bf16[3,1,128], index: 2, kind: input, shape index: {}]   ;;  %s2030_s3 = inlined_call_operand.hbm [shape: bf16[2,4,256], index: 3, kind: output, shape index: {0}]   ;;  %s2031_s4 = inlined_call_operand.hbm [shape: f32[2,2,4,2], index: 4, kind: output, shape index: {1}]  }
   0x1   :  { %2040 = sst [smem:[#allocation18_spill]] %s2028_s1 }
   0x2   :  { %2041 = sst [smem:[#allocation19_spill]] %s2029_s2 }
   0x3   :  { %2042 = sst [smem:[#allocation20_spill]] %s2031_s4 }
   0x4   :  { %10 = vsyncpa [#allocation3], 0 }
   0x5   :  { %12 = vsyncpa [#allocation3 + $0x1], 0 }
   0x6   :  { %13 = vsyncpa [#allocation6], 0 }
   0x7   :  { %14 = vsyncpa [#allocation4], 0 }
   0x8   :  { %16 = vsyncpa [#allocation4 + $0x1], 0 }
   0x9   :  { %17 = vsyncpa [#allocation10], 0 }
   0xa   :  { %19 = vsyncpa [#allocation10 + $0x1], 0  ;;  %s1637_s15 = smov 0   ;;  %s1639_s16 = smov 0  }
   0xb   :  { %s1641_s17 = smov 0   ;;  %s1643_s18 = smov 0  }
   0xc   :  { %s1645_s19 = smov 0   ;;  %s1647_s20 = smov 0  }
   0xd   :  { %s1649_s21 = smov 0   ;;  %s1651_s22 = smov 0  }
   0xe LB: > { %2043 = sst [smem:[#allocation15_spill]] %s1557_s15  ;;  %s1104_s23 = sadd.s32 4294967295, %s1585_s22   ;;  %s1585_s22 = sphi %s1651_s22, %s25_s22   ;;  %s1581_s21 = sphi %s1649_s21, %s2072_s21   ;;  %s1577_s20 = sphi %s1647_s20, %s2071_s20   ;;  %s1573_s19 = sphi %s1645_s19, %s2070_s19   ;;  %s1569_s18 = sphi %s1643_s18, %s2069_s18   ;;  %s1565_s17 = sphi %s1641_s17, %s2068_s17   ;;  %s1561_s16 = sphi %s1639_s16, %s2067_s16   ;;  %s1557_s15 = sphi %s1637_s15, %s2066_s15  }
   0xf   : > { %s1105_s24 = sadd.s32 4294967294, %s1585_s22   ;;  %p59_p0 = scmp.ne.s32.totalorder %s1561_s16, %s1557_s15 }
  0x10   : > { %p1681_p1 = scmp.eq.s32.totalorder %s1104_s23, 0  ;;  %p1685_p2 = scmp.eq.s32.totalorder %s1104_s23, 3 }
  0x11   : > { %p133_p3 = scmp.eq.s32.totalorder %s1105_s24, 3  ;;  %p1106_p5 = scmp.ge.s32.totalorder %s1585_s22, 1 }
  0x12   : > { %s2044_s25 = scalar_select %p1681_p1, 1, 0 }
  0x13   : > { %s2045_s26 = scalar_select %p1685_p2, 1, 0 }
  0x14   : > { %p1691_p4 = por %p1681_p1, %p59_p0  ;;  %p1696_p6 = por %p133_p3, %p59_p0 }
  0x15   : > { %p168_p7 = scmp.lt.s32.totalorder %s1585_s22, 5  ;;  %s1587_s30 = smov [#allocation5]  }
  0x16   : > { %s2046_s27 = scalar_select %p1691_p4, 1, 0 }
  0x17   : > { %s2047_s28 = scalar_select %p1696_p6, 1, 0 }
  0x18   : > { %p1701_p8 = pnand %p1106_p5, %p168_p7  ;;  %s180_s5 = sshll.u32 %s1587_s30, 4  ;;  %s181_s5 = int_to_ptr.vmem [resolvable:$true] %s180_s5 }
  0x19   : > { %2048 = sst [smem:[#allocation16_spill]] %s2047_s28  ;;  %s1588_s7 = smov [#allocation7]  }
  0x1a   : > { %s2049_s29 = scalar_select %p1701_p8, 1, 0 }
  0x1b   : > { %p1255_p9 = pneg %p1701_p8  ;;  %s193_s8 = sshll.u32 %s1588_s7, 4  ;;  %s1713_s8 = int_to_ptr.vmem [resolvable:$true] %s193_s8 }
  0x1c   : > { %s2051_s1 = sld [smem:[#allocation18_spill]] }
  0x1d   : > { %p1709_p10 = pnand %p1255_p9, %p1681_p1 }
  0x1f   : > { %p1367_p12 = pneg %p1709_p10 }
  0x22   : > { %s1365_s11 = scalar_lea.hbm %s2051_s1, 288 }
  0x23   : > { %p1366_p11 = scmp.ne.s32.totalorder %s2051_s1, %s1365_s11  ;;  %p1372_p3 = scmp.lt.u32.totalorder %s1365_s11, %s2051_s1 }
  0x25   : > { %p1368_p13 = pnand %p1367_p12, %p1366_p11 }
  0x27   : > { %p1369_p0 = pneg %p1368_p13 }
  0x29   : > { %p1374_p5 = pnand %p1372_p3, %p1369_p0 }
  0x2b   : > { %1377 = shalt.err (!%p1374_p5)
}
  0x2c   : > { %s1378_s24 = scalar_lea.vmem %s181_s5, 288  ;;  %p1386_p1 = scmp.lt.s32.totalorder %s181_s5, %s181_s5 }
  0x2d   : > { %p1379_p7 = scmp.ne.s32.totalorder %s181_s5, %s1378_s24  ;;  %p1387_p4 = scmp.lt.s32.totalorder %s1378_s24, %s1378_s24 }
  0x2f   : > { %p1381_p9 = pnand %p1379_p7, %p1367_p12  ;;  %p1388_p8 = por %p1387_p4, %p1386_p1 }
  0x31   : > { %p1382_p6 = pneg %p1381_p9 }
  0x33   : > { %p1389_p2 = pnand %p1388_p8, %p1382_p6 }
  0x35   : > { %1392 = shalt.err (!%p1389_p2)
}
  0x36   : > { %s1589_s30 = smov 32   ;;  %s1590_s7 = smov 2  }
  0x37   : > { %1258 = dma.hbm_to_vmem [thread:$0]  (!%p1709_p10), %s2051_s1, 288, %s181_s5, [#allocation6], %s1589_s30, %s1589_s30, %s1590_s7  }
  0x38   : > { %s2052_s2 = sld [smem:[#allocation19_spill]] }
  0x3e   : > { %s1393_s13 = scalar_lea.hbm %s2052_s2, 48 }
  0x3f   : > { %p1394_p11 = scmp.ne.s32.totalorder %s2052_s2, %s1393_s13  ;;  %p1400_p4 = scmp.lt.u32.totalorder %s1393_s13, %s2052_s2 }
  0x41   : > { %p1396_p1 = pnand %p1394_p11, %p1367_p12 }
  0x43   : > { %p1397_p2 = pneg %p1396_p1 }
  0x45   : > { %p1402_p6 = pnand %p1400_p4, %p1397_p2 }
  0x47   : > { %1405 = shalt.err (!%p1402_p6)
}
  0x48   : > { %s1406_s5 = scalar_lea.vmem %s1713_s8, 48  ;;  %s1413_s30 = scalar_lea.vmem %s1713_s8, 64 }
  0x49   : > { %p1407_p8 = scmp.ne.s32.totalorder %s1713_s8, %s1406_s5  ;;  %p1414_p3 = scmp.lt.s32.totalorder %s1713_s8, %s1713_s8 }
  0x4a   : > { %p1415_p5 = scmp.lt.s32.totalorder %s1413_s30, %s1406_s5 }
  0x4b   : > { %p1409_p13 = pnand %p1407_p8, %p1367_p12 }
  0x4c   : > { %p1416_p7 = por %p1415_p5, %p1414_p3 }
  0x4d   : > { %p1410_p0 = pneg %p1409_p13 }
  0x4f   : > { %p1417_p9 = pnand %p1416_p7, %p1410_p0 }
  0x51   : > { %1420 = shalt.err (!%p1417_p9)
}
  0x52   : > { %s1591_s28 = smov 16   ;;  %s1592_s7 = smov 1  }
  0x53   : > { %1261 = dma.hbm_to_vmem [thread:$0]  (!%p1709_p10), %s2052_s2, 48, %s1713_s8, [#allocation6], %s1591_s28, %s1591_s28, %s1592_s7  }
  0x54   : > { %s34_s11 = sadd.s32 1, %s1577_s20  ;;  %s37_s12 = sadd.s32 1, %s1581_s21 }
  0x55   : > { %p35_p12 = scmp.ge.s32.totalorder %s34_s11, 2  ;;  %s46_s13 = sadd.s32 1, %s1565_s17 }
  0x56   : > { %p53_p11 = scmp.ne.s32.totalorder %s1565_s17, %s1561_s16  ;;  %p54_p1 = scmp.eq.s32.totalorder %s1585_s22, 0 }
  0x57   : > { %s2074_s11 = smov (%p35_p12, %s34_s11), 0  ;;  %s2076_s12 = smov (!%p35_p12, %s37_s12), %s1581_s21 }
  0x58   : > { %2053 = sst [smem:[#allocation17_spill]] %s2074_s11  ;;  %s42_s14 = ssub.s32 %s1577_s20, %s2074_s11 }
  0x59   : > { %p1774_p2 = por %p54_p1, %p53_p11  ;;  %p39_p10 = scmp.ge.s32.totalorder %s2076_s12, 2 }
  0x5a   : > { %p2055_p4 = scmp.ne.s32.totalorder %s2045_s26, 0  ;;  %p1275_p8 = scmp.lt.s32.totalorder %s1585_s22, 4 }
  0x5b   : > { %s207_s23 = sand.u32 1, %s1565_s17   ;;  %s2078_s12 = smov (%p39_p10, %s2076_s12), 0 }
  0x5c   : > { %p1780_p6 = por %p2055_p4, %p53_p11  ;;  %s1110_s24 = sshll.u32 %s207_s23, 2 }
  0x5d   : > { %s41_s5 = ssub.s32 %s1581_s21, %s2078_s12  ;;  %s1111_s28 = sshll.u32 %s1577_s20, 1 }
  0x5e   : > { %s43_s30 = sor.u32 %s42_s14, %s41_s5  ;;  %s1112_s7 = sshll.u32 %s1581_s21, 2 }
  0x5f   : > { %p44_p13 = scmp.eq.s32.totalorder %s43_s30, 0  ;;  %s217_s9 = sadd.s32 %s1112_s7, %s1111_s28 }
  0x60   : > { %s211_s10 = scalar_lea.vmem [#allocation2], %s1110_s24  ;;  %s1113_s2 = sshll.u32 %s217_s9, 5 }
  0x61   : > { %s221_s26 = sshll.u32 %s211_s10, 4  ;;  %s1800_s4 = scalar_lea.hbm %s2027_s0, %s1113_s2  ;;  %s1795_s26 = int_to_ptr.vmem [resolvable:$true] %s221_s26 }
  0x62   : > { %s1793_s1 = scalar_select %p44_p13, %s1565_s17, %s46_s13  }
  0x63   : > { %p1806_p0 = pnand %p1275_p8, %p1774_p2  ;;  %s208_s13 = scalar_lea.sflag [#allocation3], %s207_s23 }
  0x64   : > { %s1421_s24 = scalar_lea.hbm %s1800_s4, 64  ;;  %s1426_s11 = scalar_lea.hbm %s2027_s0, 256 }
  0x65   : > { %p1422_p3 = scmp.ne.s32.totalorder %s1800_s4, %s1421_s24  ;;  %p1423_p5 = pneg %p1806_p0 }
  0x66   : > { %p1427_p12 = scmp.lt.u32.totalorder %s1800_s4, %s2027_s0  ;;  %p1428_p11 = scmp.lt.u32.totalorder %s1426_s11, %s1421_s24 }
  0x67   : > { %p1424_p7 = pnand %p1423_p5, %p1422_p3  ;;  %p1430_p2 = scmp.lt.u32.totalorder %s1421_s24, %s1800_s4 }
  0x68   : > { %p1429_p1 = por %p1428_p11, %p1427_p12 }
  0x69   : > { %p1425_p9 = pneg %p1424_p7 }
  0x6a   : > { %p1431_p10 = por %p1430_p2, %p1429_p1 }
  0x6c   : > { %p1432_p4 = pnand %p1431_p10, %p1425_p9 }
  0x6e   : > { %1435 = shalt.err (!%p1432_p4)
}
  0x6f   : > { %s1436_s23 = scalar_lea.vmem %s1795_s26, 64  ;;  %s1593_s30 = smov [#allocation2]  }
  0x70   : > { %p1437_p8 = scmp.ne.s32.totalorder %s1795_s26, %s1436_s23  ;;  %s1441_s28 = sshll.u32 %s1593_s30, 4  ;;  %s1442_s28 = int_to_ptr.vmem [resolvable:$false] %s1441_s28 }
  0x71   : > { %s1443_s7 = scalar_lea.vmem %s1442_s28, 128  ;;  %p1444_p7 = scmp.lt.s32.totalorder %s1795_s26, %s1442_s28 }
  0x72   : > { %p1439_p13 = pnand %p1437_p8, %p1423_p5  ;;  %p1445_p12 = scmp.lt.s32.totalorder %s1443_s7, %s1436_s23 }
  0x74   : > { %p1440_p3 = pneg %p1439_p13  ;;  %p1446_p11 = por %p1445_p12, %p1444_p7 }
  0x76   : > { %p1447_p1 = pnand %p1446_p11, %p1440_p3 }
  0x78   : > { %1450 = shalt.err (!%p1447_p1)
}
  0x79   : > { %1265 = dma.hbm_to_vmem [thread:$0]  (!%p1806_p0), %s1800_s4, 64, %s1795_s26, %s208_s13  }
  0x7a   : > { %p2058_p9 = scmp.ne.s32.totalorder %s2049_s29, 0 }
  0x7b   : > { %s1838_s9 = sand.u32 (!%p2058_p9), 1, %s1561_s16   ;;  %p2059_p5 = scmp.ne.s32.totalorder (!%p2058_p9), %s2046_s27, 0 }
  0x7c   : > { %230 = sbr.rel (%p2058_p9) target bundleno = 945 (0x3b1), region = 32  ;;  %s1115_s10 = sshll.u32 (!%p2058_p9), %s1838_s9, 2 }
  0x7d   : > { %s233_s24 = scalar_lea.sflag (!%p2058_p9), [#allocation3], %s1838_s9  ;;  %s1844_s2 = scalar_lea.vmem (!%p2058_p9), [#allocation2], %s1115_s10 }
  0x83   : > { %1540 = dma.done.wait (%p2059_p5), %s233_s24, 64  }
  0x84   : > { %1542 = vsyncadd (%p2059_p5), %s233_s24, 4294967232  ;;  %p2060_p0 = scmp.ne.s32.totalorder %s2044_s25, 0 }
  0x86   : > { %1544 = dma.done.wait (%p2060_p0), [#allocation6], 336  }
  0x87   : > { %1546 = vsyncadd (%p2060_p0), [#allocation6], 4294966960  ;;  %v280_v0 = vlaneseq  ;;  %v1594_v1 = vmov 1983009808   ;;  %v400_v6 = vld [vmem:[#allocation7 + $0x2] sm:$0x1] }
  0x88   : > { %v410_v2 = vunpack.c.l.s4 %v1594_v1  ;;  %v276_v7 = vld [vmem:[#allocation7] sm:$0x1]  ;;  %v402_v8 = vpack.i.b16 %v400_v6, %v400_v6  ;;  %s1595_s4 = smov 18   ;;  %s1596_s25 = smov 2   ;;  %v1602_v17 = vmov 0.0   ;;  %vm1603_vm0 = vmmov 0  }
  0x89   : > { %v281_v3 = vshrl.u32 %v280_v0, 7  ;;  %v278_v10 = vpack.i.b16 %v276_v7, %v276_v7  ;;  %s1597_s27 = smov 32   ;;  %s1598_s29 = smov 16   ;;  %1158 = vmatprep.subr.bf16.mxu1 %v1602_v17  ;;  %1160 = vmatprep.mubr.msk.bf16.mxu1 %vm1603_vm0, %v1602_v17  ;;  %vm636_vm1 = vcmask 146432   ;;  %vm419_vm2 = vcmask 15360  }
  0x8a   : > { %v411_v4 = vunpack.c.0.s8 %v410_v2  ;;  %v1862_v15 = vld.sshfl [vmem:[%s1844_s2] sm:$0x33 pattern:$0x76325410]  ;;  %s1599_s26 = smov 34   ;;  %s1600_s14 = smov 111   ;;  %1182 = vmatprep.subr.bf16.mxu0 %v1602_v17  ;;  %1184 = vmatprep.mubr.msk.bf16.mxu0 %vm1603_vm0, %v1602_v17 }
  0x8b   : > { %v282_v5 = vsub.s32 0, %v281_v3  ;;  %v1866_v16 = vcombine.high %v1862_v15, %v1862_v15  ;;  %s1601_s13 = smov 127   ;;  %v632_v20 = vld [vmem:[%s1844_s2] sm:$0xf]  ;;  %vm708_vm3 = vcmask 261120   ;;  %s1604_s15 = smov 110  }
  0x8c   : > { %v1854_v9 = vsub.s32 %v411_v4, %v281_v3  ;;  %v398_v24 = vld [vmem:[%s1844_s2] sm:$0xf]  ;;  %vm499_vm4 = vcmask 130048   ;;  %vm583_vm5 = vcmask 908288   ;;  %s1605_s11 = smov 96   ;;  %vm845_vm6 = vcmask 277504  }
  0x8d   : > { %v407_v11 = vrot.slane %v402_v8, %v282_v5  ;;  %v1856_v12 = vrot.slane %v278_v10, %v282_v5  ;;  %v704_v29 = vld [vmem:[%s1844_s2] sm:$0xf]  ;;  %vm308_vm7 = vcmask 1041408   ;;  %vm302_vm8 = vcmask 1039360   ;;  %v569_v54 = vld [vmem:[#allocation5 + $0x8] sm:$0x3] }
  0x8e   : > { %v487_v41 = vld [vmem:[%s1844_s2] sm:$0xf]  ;;  %s1606_s6 = smov 126   ;;  %vm304_vm9 = vcmask 31744   ;;  %v288_v61 = vld [vmem:[#allocation5 + $0x2] sm:$0x3] }
  0x8f   : > { %v415_v13 = vrot.slane %v407_v11, %v1854_v9  ;;  %v495_v14 = vrot.slane %v1856_v12, %v1854_v9  ;;  %v275_v47 = vld [vmem:[%s1844_s2] sm:$0x3]  ;;  %s1607_s5 = smov 95   ;;  %s1608_s23 = smov 112   ;;  %v285_v2 = vld [vmem:[#allocation5] sm:$0x3] }
  0x90   : > { %v841_v52 = vld [vmem:[%s1844_s2] sm:$0xf]  ;;  %v284_v56 = vmul.bf16 %v1856_v12, %v275_v47  ;;  %s1609_s30 = smov 94   ;;  %vm655_vm10 = vcmask 900096   ;;  %vm727_vm11 = vcmask 785408   ;;  %vm438_vm12 = vcmask 1031168  }
  0x91   : > { %633 = vrot.lane.b32.xlu0 %v415_v13, %s1595_s4  ;;  %416 = vrot.lane.b32.xlu1 %v415_v13, %s1596_s25  ;;  %v641_v8 = vld [vmem:[#allocation5 + $0xa] sm:$0x3]  ;;  %vm792_vm13 = vcmask 777216   ;;  %vm518_vm14 = vcmask 916480   ;;  %vm864_vm15 = vcmask 769024   ;;  %s1118_s28 = sshll.u32 %s1838_s9, 1 }
  0x92   : > { %v356_v62 = vsel %vm308_vm7, %v284_v56, 0  ;;  %s266_s7 = scalar_lea.vmem [#allocation8], %s1118_s28  ;;  %s1935_s24 = scalar_lea.vmem [#allocation9], %s1115_s10 }
  0x93   : > { %s1134_s2 = sshll.u32 %s1573_s19, 1  ;;  %s930_s10 = scalar_lea.sflag [#allocation4], %s1838_s9 }
  0x94   : > { %s1941_s4 = sadd.s32 %s1569_s18, %s1134_s2 }
  0x95   : > { %705 = vrot.lane.b32.xlu0 %v495_v14, %s1597_s27  ;;  %496 = vrot.lane.b32.xlu1 %v495_v14, %s1598_s29  ;;  %s1135_s25 = sshll.u32 %s1941_s4, 5 }
  0x99   : > { %842 = vrot.lane.b32.xlu0 %v415_v13, %s1599_s26  ;;  %579 = vrot.lane.b32.xlu1 %v1862_v15, %s1600_s14  ;;  %s1947_s26 = scalar_lea.hbm %s2030_s3, %s1135_s25 }
  0x9d   : > { %581 = vrot.lane.b32.xlu0 %v1866_v16, %s1600_s14  ;;  %298 = vrot.lane.b32.xlu1 %v1862_v15, %s1601_s13  ;;  %s950_s14 = sshll.u32 %s266_s7, 4  ;;  %s951_s14 = int_to_ptr.vmem [resolvable:$true] %s950_s14 }
  0xa1   : > { %300 = vrot.lane.b32.xlu0 %v1866_v16, %s1601_s13  ;;  %s1451_s13 = scalar_lea.vmem %s951_s14, 32 }
  0xa2   : > { %p1452_p2 = scmp.ne.s32.totalorder %s951_s14, %s1451_s13 }
  0xa4   : > { %p1453_p10 = pnand %p1452_p2, %p1780_p6 }
  0xa6   : > { %p1454_p4 = pneg %p1453_p10 }
 0x103   : > { %v634_v18 = vpop.permute.xlu0 %633  ;;  %v417_v19 = vpop.permute.xlu1 %416 }
 0x104   : > { %v635_v21 = vrot.slane %v634_v18, 6  ;;  %v418_v22 = vrot.slane %v417_v19, 6 }
 0x106   : > { %v637_v23 = vsel %vm636_vm1, %v635_v21, %v634_v18  ;;  %v420_v25 = vsel %vm419_vm2, %v418_v22, %v417_v19  ;;  %v424_v18 = vld [vmem:[#allocation5 + $0x4] sm:$0x3]  ;;  %v713_v22 = vld [vmem:[#allocation5 + $0xc] sm:$0x3]  ;;  %vm915_vm1 = vcmask 1043456  }
 0x107   : > { %v639_v26 = vmul.bf16 %v637_v23, %v632_v20  ;;  %v706_v27 = vpop.permute.xlu0 %705  ;;  %v497_v28 = vpop.permute.xlu1 %496  ;;  %v422_v31 = vmul.bf16 %v420_v25, %v398_v24 }
 0x108   : > { %v707_v30 = vrot.slane %v706_v27, 6  ;;  %v498_v34 = vrot.slane %v497_v28, 6 }
 0x109   : > { %v649_v32 = vrot.slane %v639_v26, %v1854_v9  ;;  %v432_v40 = vrot.slane %v422_v31, %v1854_v9  ;;  %v778_v31 = vld [vmem:[#allocation5 + $0xe] sm:$0x3] }
 0x10a   : > { %v709_v33 = vsel %vm708_vm3, %v707_v30, %v706_v27  ;;  %v500_v42 = vsel %vm499_vm4, %v498_v34, %v497_v28 }
 0x10b   : > { %v711_v35 = vmul.bf16 %v709_v33, %v704_v29  ;;  %651 = vrot.lane.b32.xlu1 %v649_v32, %s1604_s15  ;;  %v650_v36 = vcombine.high %v649_v32, %v649_v32  ;;  %v843_v37 = vpop.permute.xlu0 %842  ;;  %v580_v38 = vpop.permute.xlu1 %579  ;;  %v433_v48 = vcombine.high %v432_v40, %v432_v40  ;;  %v502_v49 = vmul.bf16 %v500_v42, %v487_v41  ;;  %v504_v29 = vld [vmem:[#allocation5 + $0x6] sm:$0x3]  ;;  %v850_v33 = vld [vmem:[#allocation5 + $0x10] sm:$0x3] }
 0x10c   : > { %v844_v43 = vrot.slane %v843_v37, 6 }
 0x10d   : > { %653 = vrot.lane.b32.xlu0 %v650_v36, %s1604_s15  ;;  %v721_v39 = vrot.slane %v711_v35, %v1854_v9  ;;  %v512_v58 = vrot.slane %v502_v49, %v1854_v9  ;;  %s1610_s15 = smov [#allocation8]  }
 0x10e   : > { %v846_v53 = vsel %vm845_vm6, %v844_v43, %v843_v37 }
 0x10f   : > { %723 = vrot.lane.b32.xlu1 %v721_v39, %s1605_s11  ;;  %v722_v44 = vcombine.high %v721_v39, %v721_v39  ;;  %v582_v45 = vpop.permute.xlu0 %581  ;;  %v299_v50 = vpop.permute.xlu1 %298  ;;  %v848_v59 = vmul.bf16 %v846_v53, %v841_v52  ;;  %v513_v63 = vcombine.high %v512_v58, %v512_v58 }
 0x110   : > { %v584_v46 = vsel %vm583_vm5, %v580_v38, %v582_v45 }
 0x111   : > { %725 = vrot.lane.b32.xlu0 %v722_v44, %s1605_s11  ;;  %v589_v51 = vsel %vm308_vm7, %v584_v46, 0  ;;  %v858_v0 = vrot.slane %v848_v59, %v1854_v9  ;;  %s1455_s11 = sshll.u32 %s1610_s15, 4  ;;  %s1456_s11 = int_to_ptr.vmem [resolvable:$false] %s1455_s11 }
 0x112   : > { %1183 = vmatpush3.bf16.msra.mxu0 %v589_v51  ;;  %s1457_s18 = scalar_lea.vmem %s1456_s11, 64  ;;  %p1458_p8 = scmp.lt.s32.totalorder %s951_s14, %s1456_s11 }
 0x113   : > { %434 = vrot.lane.b32.xlu1 %v432_v40, %s1606_s6  ;;  %v301_v55 = vpop.permute.xlu0 %300  ;;  %1188 = vmatprep.subr.bf16.mxu0 %v1602_v17  ;;  %v859_v1 = vcombine.high %v858_v0, %v858_v0  ;;  %p1459_p13 = scmp.lt.s32.totalorder %s1457_s18, %s1451_s13 }
 0x114   : > { %v303_v57 = vsel %vm302_vm8, %v299_v50, %v301_v55 }
 0x115   : > { %436 = vrot.lane.b32.xlu0 %v433_v48, %s1606_s6  ;;  %v310_v60 = vsel %vm308_vm7, %v303_v57, 0  ;;  %1185 = vmatmul.mubr.msk.bf16.vlgmr.msra.gmra.mrb[0].mxu0 %vm304_vm9, %v569_v54  ;;  %p1460_p3 = por %p1459_p13, %p1458_p8 }
 0x116   : > { %1159 = vmatpush3.bf16.msra.mxu1 %v310_v60  ;;  %1190 = vmatprep.mubr.msk.bf16.mxu0 %vm1603_vm0, %v1602_v17 }
 0x117   : > { %788 = vrot.lane.b32.xlu1 %v1862_v15, %s1607_s5  ;;  %1164 = vmatprep.subr.bf16.mxu1 %v1602_v17  ;;  %p1461_p7 = pnand %p1460_p3, %p1454_p4 }
 0x119   : > { %790 = vrot.lane.b32.xlu0 %v1866_v16, %s1607_s5  ;;  %1161 = vmatmul.mubr.msk.bf16.vlgmr.msra.gmra.mrb[0].mxu1 %vm304_vm9, %v288_v61 }
 0x11a   : > { %1165 = vmatpush3.bf16.msra.mxu1 %v356_v62  ;;  %1166 = vmatprep.mubr.msk.bf16.mxu1 %vm1603_vm0, %v1602_v17 }
 0x11b   : > { %514 = vrot.lane.b32.xlu1 %v512_v58, %s1608_s23  ;;  %1170 = vmatprep.subr.bf16.mxu1 %v1602_v17 }
 0x11d   : > { %516 = vrot.lane.b32.xlu0 %v513_v63, %s1608_s23 }
 0x11f   : > { %860 = vrot.lane.b32.xlu1 %v858_v0, %s1609_s30 }
 0x121   : > { %862 = vrot.lane.b32.xlu0 %v859_v1, %s1609_s30 }
 0x125   : > { %1167 = vmatmul.mubr.msk.bf16.vlgmr.msra.gmra.mrb[0].mxu1 %vm304_vm9, %v285_v2 }
 0x126   : > { %1172 = vmatprep.mubr.msk.bf16.mxu1 %vm1603_vm0, %v1602_v17 }
 0x17d   : > { %v652_v3 = vpop.permute.xlu1 %651 }
 0x17f   : > { %v654_v4 = vpop.permute.xlu0 %653 }
 0x180   : > { %v656_v5 = vsel %vm655_vm10, %v652_v3, %v654_v4 }
 0x181   : > { %v661_v6 = vsel %vm308_vm7, %v656_v5, 0  ;;  %v724_v7 = vpop.permute.xlu1 %723 }
 0x182   : > { %1189 = vmatpush3.bf16.msra.mxu0 %v661_v6 }
 0x183   : > { %v726_v9 = vpop.permute.xlu0 %725  ;;  %1194 = vmatprep.subr.bf16.mxu0 %v1602_v17 }
 0x184   : > { %v728_v10 = vsel %vm727_vm11, %v724_v7, %v726_v9 }
 0x185   : > { %v733_v11 = vsel %vm308_vm7, %v728_v10, 0  ;;  %1191 = vmatmul.mubr.msk.bf16.vlgmr.msra.gmra.mrb[0].mxu0 %vm304_vm9, %v641_v8  ;;  %v435_v12 = vpop.permute.xlu1 %434 }
 0x186   : > { %1195 = vmatpush3.bf16.msra.mxu0 %v733_v11  ;;  %1196 = vmatprep.mubr.msk.bf16.mxu0 %vm1603_vm0, %v1602_v17 }
 0x187   : > { %v437_v13 = vpop.permute.xlu0 %436  ;;  %1200 = vmatprep.subr.bf16.mxu0 %v1602_v17 }
 0x188   : > { %v439_v14 = vsel %vm438_vm12, %v435_v12, %v437_v13 }
 0x189   : > { %v444_v15 = vsel %vm308_vm7, %v439_v14, 0  ;;  %v789_v16 = vpop.permute.xlu1 %788 }
 0x18a   : > { %1171 = vmatpush3.bf16.msra.mxu1 %v444_v15 }
 0x18b   : > { %v791_v19 = vpop.permute.xlu0 %790  ;;  %1176 = vmatprep.subr.bf16.mxu1 %v1602_v17 }
 0x18c   : > { %v793_v20 = vsel %vm792_vm13, %v789_v16, %v791_v19 }
 0x18d   : > { %1173 = vmatmul.mubr.msk.bf16.vlgmr.msra.gmra.mrb[0].mxu1 %vm304_vm9, %v424_v18  ;;  %v515_v21 = vpop.permute.xlu1 %514  ;;  %v798_v23 = vsel %vm308_vm7, %v793_v20, 0 }
 0x18e   : > { %1178 = vmatprep.mubr.msk.bf16.mxu1 %vm1603_vm0, %v1602_v17 }
 0x18f   : > { %v517_v24 = vpop.permute.xlu0 %516 }
 0x190   : > { %v519_v25 = vsel %vm518_vm14, %v515_v21, %v517_v24 }
 0x191   : > { %1197 = vmatmul.mubr.msk.bf16.vlgmr.msra.gmra.mrb[0].mxu0 %vm304_vm9, %v713_v22  ;;  %v524_v26 = vsel %vm308_vm7, %v519_v25, 0  ;;  %v861_v27 = vpop.permute.xlu1 %860 }
 0x192   : > { %1177 = vmatpush3.bf16.msra.mxu1 %v524_v26  ;;  %1201 = vmatpush3.bf16.msra.mxu0 %v798_v23 }
 0x193   : > { %1202 = vmatprep.mubr.msk.bf16.mxu0 %vm1603_vm0, %v1602_v17  ;;  %1206 = vmatprep.subr.bf16.mxu0 %v1602_v17  ;;  %v863_v28 = vpop.permute.xlu0 %862 }
 0x194   : > { %v865_v30 = vsel %vm864_vm15, %v861_v27, %v863_v28 }
 0x195   : > { %v870_v32 = vsel %vm308_vm7, %v865_v30, 0 }
 0x199   : > { %1179 = vmatmul.mubr.msk.bf16.vlgmr.msra.gmra.mrb[0].mxu1 %vm304_vm9, %v504_v29 }
 0x19d   : > { %1203 = vmatmul.mubr.msk.bf16.vlgmr.msra.gmra.mrb[0].mxu0 %vm304_vm9, %v778_v31 }
 0x19e   : > { %1207 = vmatpush3.bf16.msra.mxu0 %v870_v32  ;;  %1208 = vmatprep.mubr.msk.bf16.mxu0 %vm1603_vm0, %v1602_v17  ;;  %vm921_vm0 = vcmask 3072  }
 0x1a9   : > { %1209 = vmatmul.mubr.msk.bf16.vlgmr.msra.gmra.mrb[0].mxu0 %vm304_vm9, %v850_v33 }
 0x26c   : > { %v560_v34 = vpop.f32.mrb[0].mxu1 }
 0x26d   : > { %v1180_v35 = vpop.f32.mrb[1].mxu1 }
 0x26e   : > { %v563_v36 = vpop.f32.mrb[2].mxu1 }
 0x26f   : > { %v1181_v37 = vpop.f32.mrb[3].mxu1 }
 0x27c   : > { %v906_v38 = vpop.f32.mrb[0].mxu0 }
 0x27d   : > { %v1212_v39 = vadd.f32 %v906_v38, %v560_v34  ;;  %v1210_v40 = vpop.f32.mrb[1].mxu0 }
 0x27e   : > { %v909_v41 = vpop.f32.mrb[2].mxu0 }
 0x27f   : > { %v913_v42 = vpack.c.bf16 %v1212_v39, %v1212_v39  ;;  %v1211_v43 = vpop.f32.mrb[3].mxu0  ;;  %v916_v17 = vsel %vm915_vm1, %v1212_v39, 0.0 }
 0x280   : > { %917 = vadd.xlane.f32.xlu1 %v916_v17 }
 0x281   : > { %914 = vst [vmem:[%s266_s7] sm:$0x3] %v913_v42 }
 0x30d   : > { %v918_v44 = vpop.xlane.xlu1 %917 }
 0x30e   : > { %v919_v45 = vmul.f32 0.0078125, %v918_v44  ;;  %922 = vst.msk [vmem:[%s1935_s24] sm:$0xf] %vm921_vm0, %v918_v44 }
 0x310   : > { %v920_v46 = vsub.f32 %v1212_v39, %v919_v45 }
 0x312   : > { %v923_v47 = vmul.f32 %v920_v46, %v920_v46 }
 0x314   : > { %v924_v48 = vsel %vm915_vm1, %v923_v47, 0.0 }
 0x315   : > { %925 = vadd.xlane.f32.xlu0 %v924_v48 }
 0x316   : > { %1464 = shalt.err (!%p1461_p7)
}
 0x317   : > { %s1465_s19 = scalar_lea.hbm %s1947_s26, 32  ;;  %s1469_s23 = scalar_lea.hbm %s2030_s3, 128 }
 0x318   : > { %p1466_p12 = scmp.ne.s32.totalorder %s1947_s26, %s1465_s19  ;;  %p1470_p9 = scmp.lt.u32.totalorder %s1947_s26, %s2030_s3 }
 0x319   : > { %p1471_p5 = scmp.lt.u32.totalorder %s1469_s23, %s1465_s19  ;;  %p1473_p2 = scmp.lt.u32.totalorder %s1465_s19, %s1947_s26 }
 0x31a   : > { %p1467_p11 = pnand %p1466_p12, %p1780_p6 }
 0x31b   : > { %p1472_p0 = por %p1471_p5, %p1470_p9 }
 0x31c   : > { %p1468_p1 = pneg %p1467_p11 }
 0x31d   : > { %p1474_p10 = por %p1473_p2, %p1472_p0 }
 0x31f   : > { %p1475_p4 = pnand %p1474_p10, %p1468_p1 }
 0x321   : > { %1478 = shalt.err (!%p1475_p4)
}
 0x322   : > { %1251 = dma.vmem_to_hbm [thread:$0]  (%p1780_p6), %s951_s14, 32, %s1947_s26, %s930_s10   ;;  %vm927_vm2 = vcmask 11272  }
 0x323   : > { %s1137_s7 = sshll.u32 %s1941_s4, 6  ;;  %s965_s2 = sshll.u32 %s1935_s24, 4  ;;  %s1974_s2 = int_to_ptr.vmem [resolvable:$true] %s965_s2 }
 0x324   : > { %s2061_s29 = sld [smem:[#allocation20_spill]]  ;;  %s935_s15 = scalar_lea.sflag [#allocation10], %s1838_s9 }
 0x325   : > { %s1479_s11 = scalar_lea.vmem %s1974_s2, 64  ;;  %s1611_s4 = smov [#allocation9]  }
 0x326   : > { %p1480_p8 = scmp.ne.s32.totalorder %s1974_s2, %s1479_s11  ;;  %s1483_s26 = sshll.u32 %s1611_s4, 4  ;;  %s1484_s26 = int_to_ptr.vmem [resolvable:$false] %s1483_s26 }
 0x327   : > { %s1485_s14 = scalar_lea.vmem %s1484_s26, 128  ;;  %p1486_p7 = scmp.lt.s32.totalorder %s1974_s2, %s1484_s26 }
 0x328   : > { %p1481_p13 = pnand %p1480_p8, %p1780_p6  ;;  %p1487_p12 = scmp.lt.s32.totalorder %s1485_s14, %s1479_s11 }
 0x32a   : > { %s1972_s13 = scalar_lea.hbm %s2061_s29, %s1137_s7  ;;  %p1482_p3 = pneg %p1481_p13 }
 0x32b   : > { %p1488_p11 = por %p1487_p12, %p1486_p7 }
 0x32d   : > { %p1489_p1 = pnand %p1488_p11, %p1482_p3 }
 0x3a2   : > { %v926_v49 = vpop.xlane.xlu0 %925 }
 0x3a3   : > { %928 = vst.msk [vmem:[%s1935_s24] sm:$0xf] %vm927_vm2, %v926_v49 }
 0x3a4   : > { %1492 = shalt.err (!%p1489_p1)
}
 0x3a5   : > { %s1493_s9 = scalar_lea.hbm %s1972_s13, 64  ;;  %s1497_s18 = scalar_lea.hbm %s2061_s29, 256 }
 0x3a6   : > { %p1494_p9 = scmp.ne.s32.totalorder %s1972_s13, %s1493_s9  ;;  %p1498_p2 = scmp.lt.u32.totalorder %s1972_s13, %s2061_s29 }
 0x3a7   : > { %p1499_p10 = scmp.lt.u32.totalorder %s1497_s18, %s1493_s9  ;;  %p1501_p8 = scmp.lt.u32.totalorder %s1493_s9, %s1972_s13 }
 0x3a8   : > { %p1495_p5 = pnand %p1494_p9, %p1780_p6 }
 0x3a9   : > { %p1500_p4 = por %p1499_p10, %p1498_p2 }
 0x3aa   : > { %p1496_p0 = pneg %p1495_p5 }
 0x3ab   : > { %p1502_p13 = por %p1501_p8, %p1500_p4 }
 0x3ad   : > { %p1503_p3 = pnand %p1502_p13, %p1496_p0 }
 0x3af   : > { %1506 = shalt.err (!%p1503_p3)
}
 0x3b0   : > { %1252 = dma.vmem_to_hbm [thread:$0]  (%p1780_p6), %s1974_s2, 64, %s1972_s13, %s935_s15  }
 0x3b1 PF: > { %s2062_s5 = sld [smem:[#allocation15_spill]]  ;;  %s2063_s23 = sld [smem:[#allocation16_spill]] }
 0x3b2   : > { %p1278_p7 = scmp.ge.s32.totalorder %s1585_s22, 2 }
 0x3b7   : > { %s977_s30 = sand.u32 1, %s2062_s5   ;;  %p2064_p12 = scmp.ne.s32.totalorder %s2063_s23, 0 }
 0x3b8   : > { %s978_s28 = scalar_lea.sflag [#allocation4], %s977_s30 }
 0x3b9   : > { %p1267_p11 = pnand %p1278_p7, %p2064_p12 }
 0x3bb   : > { %1548 = dma.done.wait (!%p1267_p11), %s978_s28, 32  }
 0x3bc   : > { %1550 = vsyncadd (!%p1267_p11), %s978_s28, 4294967264  ;;  %s987_s7 = scalar_lea.sflag [#allocation10], %s977_s30 }
 0x3bd   : > { %1552 = dma.done.wait (!%p1267_p11), %s987_s7, 64  }
 0x3be   : > { %1554 = vsyncadd (!%p1267_p11), %s987_s7, 4294967232  ;;  %s25_s22 = sadd.s32 1, %s1585_s22   ;;  %s2065_s8 = sld [smem:[#allocation17_spill]] }
 0x3bf   : > { %p22_p1 = scmp.ge.s32.totalorder %s25_s22, 6   ;;  %s2066_s15 = smov %s1561_s16 }
 0x3c0   : > { %s2067_s16 = smov %s1565_s17  ;;  %s2068_s17 = smov %s1793_s1 }
 0x3c1   : > { %s2069_s18 = smov %s1577_s20  ;;  %s2070_s19 = smov %s1581_s21 }
 0x3c2   : > { %s2072_s21 = smov %s2078_s12  ;;  %24 = sbr.rel (!%p22_p1) target bundleno = 14 (0xe), region = 111 }
 0x3c4   : > { %s2071_s20 = smov %s2065_s8 }
 0x3c9   :  { %992 = vsyncpa [#allocation3], 1 }
 0x3ca   :  { %994 = vsyncpa [#allocation3 + $0x1], 1 }
 0x3cb   :  { %995 = vsyncpa [#allocation6], 1 }
 0x3cc   :  { %996 = vsyncpa [#allocation4], 1 }
 0x3cd   :  { %998 = vsyncpa [#allocation4 + $0x1], 1 }
 0x3ce   :  { %999 = vsyncpa [#allocation10], 1 }
 0x3cf   :  { %1001 = vsyncpa [#allocation10 + $0x1], 1 }

</bundles_post_ra>
